<compile_context>
chip_gen: v6e
topology: v6e:2x2x1
jax: 0.10.0
libtpu: 0.0.40
codegen_flags: <defaults>
</compile_context>

<pallas_src>
import functools

import jax
import jax.numpy as jnp
from jax.experimental import pallas as pl
from jax.experimental.pallas import tpu as pltpu


def _round_up(x, m):
    return ((x + m - 1) // m) * m


def _pad2(x, rows, cols):
    pr, pc = rows - x.shape[0], cols - x.shape[1]
    if pr or pc:
        x = jnp.pad(x, ((0, pr), (0, pc)))
    return x


def gin_kernel(tk, eps_ref, adj_ref, hrow_ref, hk_ref, w1_ref, b1_ref,
               w2_ref, b2_ref, beta_ref, snorm_ref, out_ref, acc_ref):
    k = pl.program_id(1)

    # --- k == 0: fold the GIN combine (1 + eps) * h into accumulator init ---
    # (f32 row tile -> self term and eps stay exact)
    @pl.when(k == 0)
    def _():
        acc_ref[...] = (1.0 + eps_ref[0]) * hrow_ref[...]

    # --- sum aggregation: acc += A[row_tile, k_tile] @ h[k_tile, :] ---------
    # Native bf16 x bf16 MXU matmul, f32 accumulation.  hk_ref holds the whole
    # padded h (bf16, VMEM-resident across the grid); slice the K window.
    start = pl.multiple_of(k * tk, 128)
    hk = hk_ref[pl.ds(start, tk), :]
    acc_ref[...] += jnp.dot(adj_ref[...], hk, preferred_element_type=jnp.float32)

    # --- last K step: MLP + graph norm + folded BatchNorm + ReLU ------------
    @pl.when(k == pl.num_programs(1) - 1)
    def _():
        h1 = jnp.dot(acc_ref[...], w1_ref[...],
                     preferred_element_type=jnp.float32) + b1_ref[...]
        h1 = jnp.maximum(h1, 0.0)
        y = jnp.dot(h1, w2_ref[...],
                    preferred_element_type=jnp.float32) + b2_ref[...]
        y = y * snorm_ref[...] + beta_ref[...]
        # ReLU; dropout is identity in eval mode.
        # TODO(synk): training-mode dropout (pltpu.prng_random_bits mask).
        out_ref[...] = jnp.maximum(y, 0.0)


@functools.partial(jax.jit, static_argnames=("bn_eps", "tm", "tk"))
def gin_layer(adj, h, eps, w1, b1, w2, b2, snorm_n, gamma, beta,
              run_mean, run_var, *, bn_eps=1e-5, tm=256, tk=1024):
    N, d_in = h.shape
    d_hid = w1.shape[1]
    d_out = w2.shape[1]

    # ---- fold eval-mode BatchNorm affine into the second Linear ----
    scale = gamma * jax.lax.rsqrt(run_var + bn_eps)          # (1, d_out)
    w2f = w2 * scale
    b2f = b2 * scale
    betaf = beta - run_mean * scale

    # ---- pad feature dims to multiples of 128 (lane-dense) ----
    d_in_p = _round_up(d_in, 128)
    d_hid_p = _round_up(d_hid, 128)
    d_out_p = _round_up(d_out, 128)

    # ---- tile selection -------------------------------------------------
    # Row tile: multiple of 128; keep >= 2 row tiles when possible so the
    # "parallel" i axis can be megacore-sharded on v7x.
    tm = _round_up(max(128, min(tm, _round_up(N, 128))), 128)
    Np = _round_up(N, tm)
    if Np // tm < 2 and Np >= 256:
        tm = Np // 2                      # Np is a multiple of 128 -> tm % 8 == 0
    # Contraction tile: multiple of 128 dividing Np (single step for small N).
    tk = _round_up(min(tk, Np), 128)
    if Np % tk:
        tk = Np

    adj_p = _pad2(adj, Np, Np).astype(jnp.bfloat16)    # {0,1} -> exact in bf16
    hrow_p = _pad2(h, Np, d_in_p)                      # f32 self-term operand
    hk_p = _pad2(h, Np, d_in_p).astype(jnp.bfloat16)   # bf16 contraction operand
    w1_p = _pad2(w1, d_in_p, d_hid_p)
    b1_p = _pad2(b1, 1, d_hid_p)
    w2_p = _pad2(w2f, d_hid_p, d_out_p)
    b2_p = _pad2(b2f, 1, d_out_p)
    beta_p = _pad2(betaf, 1, d_out_p)
    snorm_p = _pad2(snorm_n, Np, 1)

    grid = (Np // tm, Np // tk)

    flops = 2 * Np * Np * d_in_p + 2 * Np * (d_in_p * d_hid_p + d_hid_p * d_out_p)
    bytes_accessed = (
        adj_p.size * 2                                   # bf16 adjacency, streamed once
        + hk_p.size * 2                                  # bf16 h, resident -> read once
        + hrow_p.size * 4                                # f32 h row tiles, read once
        + (w1_p.size + w2_p.size + b1_p.size + b2_p.size + beta_p.size) * 4
        + snorm_p.size * 4
        + Np * d_out_p * 4)                              # output writeback

    # VMEM working set (double-buffered pipeline inputs/outputs + residents),
    # with headroom; capped at 64 MiB so it is safe on v7x and well above the
    # 16 MiB v5e scoped default.
    vmem_needed = (
        2 * tm * tk * 2                    # adj (bf16, double-buffered)
        + Np * d_in_p * 2                  # resident bf16 h
        + 2 * tm * d_in_p * 4              # hrow (double-buffered)
        + 2 * tm * d_out_p * 4             # output (double-buffered)
        + tm * d_in_p * 4                  # f32 accumulator scratch
        + (d_in_p * d_hid_p + d_hid_p * d_out_p) * 4     # resident weights
        + (d_hid_p + 2 * d_out_p) * 4 * 2                # small resident vectors
        + 2 * tm * 128 * 4)                # snorm tiles (lane padding slack)
    vmem_limit = int(min(max(vmem_needed + (8 << 20), 32 << 20), 64 << 20))

    # TODO(synk): for graphs with Np*d_in too large for a resident bf16 h,
    # fall back to a (tk, d_in_p) per-k BlockSpec for the contraction operand.
    kernel = pl.pallas_call(
        functools.partial(gin_kernel, tk),
        out_shape=jax.ShapeDtypeStruct((Np, d_out_p), jnp.float32),
        grid_spec=pltpu.PrefetchScalarGridSpec(
            num_scalar_prefetch=1,                       # eps -> SMEM
            grid=grid,
            in_specs=[
                pl.BlockSpec((tm, tk), lambda i, k, _: (i, k)),            # adj (bf16)
                pl.BlockSpec((tm, d_in_p), lambda i, k, _: (i, 0)),        # h rows (f32)
                pl.BlockSpec((Np, d_in_p), lambda i, k, _: (0, 0)),        # h resident (bf16)
                pl.BlockSpec((d_in_p, d_hid_p), lambda i, k, _: (0, 0)),   # w1 (resident)
                pl.BlockSpec((1, d_hid_p), lambda i, k, _: (0, 0)),        # b1 (resident)
                pl.BlockSpec((d_hid_p, d_out_p), lambda i, k, _: (0, 0)),  # w2 * bn_scale
                pl.BlockSpec((1, d_out_p), lambda i, k, _: (0, 0)),        # b2 * bn_scale
                pl.BlockSpec((1, d_out_p), lambda i, k, _: (0, 0)),        # beta - mean*scale
                pl.BlockSpec((tm, 1), lambda i, k, _: (i, 0)),             # snorm_n
            ],
            out_specs=pl.BlockSpec((tm, d_out_p), lambda i, k, _: (i, 0)),
            scratch_shapes=[pltpu.VMEM((tm, d_in_p), jnp.float32)],        # A@h accumulator
        ),
        compiler_params=pltpu.CompilerParams(
            dimension_semantics=("parallel", "arbitrary"),
            vmem_limit_bytes=vmem_limit),
        cost_estimate=pl.CostEstimate(
            flops=flops, transcendentals=0, bytes_accessed=bytes_accessed),
    )
    out_p = kernel(eps, adj_p, hrow_p, hk_p, w1_p, b1_p, w2_p, b2_p, beta_p, snorm_p)
    return out_p[:N, :d_out]


def gin_layer_ref(adj, h, eps, w1, b1, w2, b2, snorm_n, gamma, beta,
                  run_mean, run_var):
    neigh = adj @ h
    x = (1.0 + eps[0]) * h + neigh
    x = jnp.maximum(x @ w1 + b1, 0.0)
    x = x @ w2 + b2
    x = x * snorm_n
    x = (x - run_mean) * jax.lax.rsqrt(run_var + 1e-5) * gamma + beta
    return jnp.maximum(x, 0.0)


if __name__ == "__main__":
    key = jax.random.PRNGKey(0)
    (k_adj, k_h, k_w1, k_b1, k_w2, k_b2,
     k_g, k_b, k_m, k_v) = jax.random.split(key, 10)

    N = 512        # number of nodes -> grid (2, 1): 2 row tiles (megacore), 1 K step
    D_IN = 128     # apply_func.mlp.input_dim  (lane-dense multiples of 128)
    D_HID = 128
    D_OUT = 128

    # Random undirected graph (dense adjacency, no self loops), float32.
    a = (jax.random.uniform(k_adj, (N, N)) < 0.05).astype(jnp.float32)
    adj = jnp.clip(a + a.T, 0.0, 1.0) * (1.0 - jnp.eye(N, dtype=jnp.float32))

    h = jax.random.normal(k_h, (N, D_IN), dtype=jnp.float32)

    # Parameters (deterministic in-script init).
    eps = jnp.array([0.0], dtype=jnp.float32)          # init_eps = 0.0
    w1 = jax.random.normal(k_w1, (D_IN, D_HID), dtype=jnp.float32) * 0.1
    b1 = jax.random.normal(k_b1, (1, D_HID), dtype=jnp.float32) * 0.01
    w2 = jax.random.normal(k_w2, (D_HID, D_OUT), dtype=jnp.float32) * 0.1
    b2 = jax.random.normal(k_b2, (1, D_OUT), dtype=jnp.float32) * 0.01

    # graph_norm scale per node (single graph of N nodes -> 1/sqrt(N)).
    snorm_n = jnp.full((N, 1), 1.0 / jnp.sqrt(N), dtype=jnp.float32)

    # BatchNorm1d(out_dim) parameters, eval mode (non-trivial running stats).
    gamma = 1.0 + 0.1 * jax.random.normal(k_g, (1, D_OUT), dtype=jnp.float32)
    beta = 0.1 * jax.random.normal(k_b, (1, D_OUT), dtype=jnp.float32)
    run_mean = 0.1 * jax.random.normal(k_m, (1, D_OUT), dtype=jnp.float32)
    run_var = 0.5 + jax.random.uniform(k_v, (1, D_OUT), dtype=jnp.float32)

    out = gin_layer(adj, h, eps, w1, b1, w2, b2, snorm_n, gamma, beta,
                    run_mean, run_var)
    out = jax.block_until_ready(out)

    ref = gin_layer_ref(adj, h, eps, w1, b1, w2, b2, snorm_n, gamma, beta,
                        run_mean, run_var)
    assert out.shape == (N, D_OUT)
    # bf16 contraction operand (h) -> ~1e-3 relative error in the neighbor sum.
    assert jnp.allclose(out, ref, atol=3e-2, rtol=3e-2), "mismatch vs reference"

    print("KERNEL_OK")
</pallas_src>

<mosaic_0001>
module attributes {stable_mosaic.version = 11 : i64} {
  func.func @gin_kernel(%arg0: i32, %arg1: i32, %arg2: memref<1xf32, #tpu.memory_space<smem>>, %arg3: memref<256x512xbf16, #tpu.memory_space<vmem>>, %arg4: memref<256x128xf32, #tpu.memory_space<vmem>>, %arg5: memref<512x128xbf16, #tpu.memory_space<vmem>>, %arg6: memref<128x128xf32, #tpu.memory_space<vmem>>, %arg7: memref<1x128xf32, #tpu.memory_space<vmem>>, %arg8: memref<128x128xf32, #tpu.memory_space<vmem>>, %arg9: memref<1x128xf32, #tpu.memory_space<vmem>>, %arg10: memref<1x128xf32, #tpu.memory_space<vmem>>, %arg11: memref<256x1xf32, #tpu.memory_space<vmem>>, %arg12: memref<256x128xf32, #tpu.memory_space<vmem>>, %arg13: memref<256x128xf32, #tpu.memory_space<vmem>>) attributes {dimension_semantics = [#tpu.dimension_semantics<parallel>, #tpu.dimension_semantics<arbitrary>], iteration_bounds = array<i64: 2, 1>, scalar_prefetch = 1 : i64, scratch_operands = 1 : i64, tpu.core_type = #tpu.core_type<tc>, window_params = [{transform_indices = @transform_0, window_bounds = array<i64: 256, 512>}, {transform_indices = @transform_1, window_bounds = array<i64: 256, 128>}, {pipeline_mode = #tpu.pipeline_mode<synchronous>, transform_indices = @transform_2, window_bounds = array<i64: 512, 128>}, {pipeline_mode = #tpu.pipeline_mode<synchronous>, transform_indices = @transform_3, window_bounds = array<i64: 128, 128>}, {pipeline_mode = #tpu.pipeline_mode<synchronous>, transform_indices = @transform_4, window_bounds = array<i64: 1, 128>}, {pipeline_mode = #tpu.pipeline_mode<synchronous>, transform_indices = @transform_5, window_bounds = array<i64: 128, 128>}, {pipeline_mode = #tpu.pipeline_mode<synchronous>, transform_indices = @transform_6, window_bounds = array<i64: 1, 128>}, {pipeline_mode = #tpu.pipeline_mode<synchronous>, transform_indices = @transform_7, window_bounds = array<i64: 1, 128>}, {transform_indices = @transform_8, window_bounds = array<i64: 256, 1>}, {transform_indices = @transform_9, window_bounds = array<i64: 256, 128>}]} {
    %c0_i32 = arith.constant 0 : i32
    %0 = arith.cmpi eq, %arg1, %c0_i32 : i32
    %1 = arith.extui %0 : i1 to i32
    %c0_i32_0 = arith.constant 0 : i32
    %2 = arith.cmpi ne, %1, %c0_i32_0 : i32
    scf.if %2 {
      %c0_9 = arith.constant 0 : index
      %15 = memref.load %arg2[%c0_9] : memref<1xf32, #tpu.memory_space<smem>>
      %cst_10 = arith.constant 1.000000e+00 : f32
      %16 = arith.addf %cst_10, %15 : f32
      %c0_11 = arith.constant 0 : index
      %c0_12 = arith.constant 0 : index
      %17 = vector.load %arg4[%c0_11, %c0_12] : memref<256x128xf32, #tpu.memory_space<vmem>>, vector<256x128xf32>
      %18 = vector.broadcast %16 : f32 to vector<256x128xf32>
      %19 = arith.mulf %18, %17 : vector<256x128xf32>
      %c0_13 = arith.constant 0 : index
      %c0_14 = arith.constant 0 : index
      %20 = vector.load %arg13[%c0_13, %c0_14] : memref<256x128xf32, #tpu.memory_space<vmem>>, vector<256x128xf32>
      tpu.vector_store %arg13[%c0_13, %c0_14], %19 {strides = array<i32>} : memref<256x128xf32, #tpu.memory_space<vmem>>, vector<256x128xf32>,
    } else {
    }
    %c512_i32 = arith.constant 512 : i32
    %3 = arith.muli %arg1, %c512_i32 : i32
    %4 = tpu.assume_multiple %3, 128 : i32
    %5 = arith.index_cast %4 : i32 to index
    %c0 = arith.constant 0 : index
    %6 = vector.load %arg5[%5, %c0] : memref<512x128xbf16, #tpu.memory_space<vmem>>, vector<512x128xbf16>
    %c0_1 = arith.constant 0 : index
    %c0_2 = arith.constant 0 : index
    %7 = vector.load %arg13[%c0_1, %c0_2] : memref<256x128xf32, #tpu.memory_space<vmem>>, vector<256x128xf32>
    %c0_3 = arith.constant 0 : index
    %c0_4 = arith.constant 0 : index
    %8 = vector.load %arg3[%c0_3, %c0_4] : memref<256x512xbf16, #tpu.memory_space<vmem>>, vector<256x512xbf16>
    %cst = arith.constant dense<0.000000e+00> : vector<256x128xf32>
    %9 = tpu.matmul %8, %6, %cst {dimension_numbers = #tpu.dot_dimension_numbers<[1], [0], [0], [1], [0, 0, 1, 1], [], []>} : vector<256x512xbf16>, vector<512x128xbf16>, vector<256x128xf32> -> vector<256x128xf32>
    %10 = arith.addf %7, %9 : vector<256x128xf32>
    %c0_5 = arith.constant 0 : index
    %c0_6 = arith.constant 0 : index
    %11 = vector.load %arg13[%c0_5, %c0_6] : memref<256x128xf32, #tpu.memory_space<vmem>>, vector<256x128xf32>
    tpu.vector_store %arg13[%c0_5, %c0_6], %10 {strides = array<i32>} : memref<256x128xf32, #tpu.memory_space<vmem>>, vector<256x128xf32>,
    %c0_i32_7 = arith.constant 0 : i32
    %12 = arith.cmpi eq, %arg1, %c0_i32_7 : i32
    %13 = arith.extui %12 : i1 to i32
    %c0_i32_8 = arith.constant 0 : i32
    %14 = arith.cmpi ne, %13, %c0_i32_8 : i32
    scf.if %14 {
      %c0_9 = arith.constant 0 : index
      %c0_10 = arith.constant 0 : index
      %15 = vector.load %arg13[%c0_9, %c0_10] : memref<256x128xf32, #tpu.memory_space<vmem>>, vector<256x128xf32>
      %c0_11 = arith.constant 0 : index
      %c0_12 = arith.constant 0 : index
      %16 = vector.load %arg6[%c0_11, %c0_12] : memref<128x128xf32, #tpu.memory_space<vmem>>, vector<128x128xf32>
      %cst_13 = arith.constant dense<0.000000e+00> : vector<256x128xf32>
      %17 = tpu.matmul %15, %16, %cst_13 {dimension_numbers = #tpu.dot_dimension_numbers<[1], [0], [0], [1], [0, 0, 1, 1], [], []>} : vector<256x128xf32>, vector<128x128xf32>, vector<256x128xf32> -> vector<256x128xf32>
      %c0_14 = arith.constant 0 : index
      %c0_15 = arith.constant 0 : index
      %18 = vector.load %arg7[%c0_14, %c0_15] : memref<1x128xf32, #tpu.memory_space<vmem>>, vector<1x128xf32>
      %19 = vector.broadcast %18 : vector<1x128xf32> to vector<256x128xf32>
      %20 = arith.addf %17, %19 : vector<256x128xf32>
      %cst_16 = arith.constant 0.000000e+00 : f32
      %21 = vector.broadcast %cst_16 : f32 to vector<256x128xf32>
      %22 = arith.maximumf %20, %21 : vector<256x128xf32>
      %c0_17 = arith.constant 0 : index
      %c0_18 = arith.constant 0 : index
      %23 = vector.load %arg8[%c0_17, %c0_18] : memref<128x128xf32, #tpu.memory_space<vmem>>, vector<128x128xf32>
      %cst_19 = arith.constant dense<0.000000e+00> : vector<256x128xf32>
      %24 = tpu.matmul %22, %23, %cst_19 {dimension_numbers = #tpu.dot_dimension_numbers<[1], [0], [0], [1], [0, 0, 1, 1], [], []>} : vector<256x128xf32>, vector<128x128xf32>, vector<256x128xf32> -> vector<256x128xf32>
      %c0_20 = arith.constant 0 : index
      %c0_21 = arith.constant 0 : index
      %25 = vector.load %arg9[%c0_20, %c0_21] : memref<1x128xf32, #tpu.memory_space<vmem>>, vector<1x128xf32>
      %26 = vector.broadcast %25 : vector<1x128xf32> to vector<256x128xf32>
      %27 = arith.addf %24, %26 : vector<256x128xf32>
      %c0_22 = arith.constant 0 : index
      %c0_23 = arith.constant 0 : index
      %28 = vector.load %arg11[%c0_22, %c0_23] : memref<256x1xf32, #tpu.memory_space<vmem>>, vector<256x1xf32>
      %29 = vector.broadcast %28 : vector<256x1xf32> to vector<256x128xf32>
      %30 = arith.mulf %27, %29 : vector<256x128xf32>
      %c0_24 = arith.constant 0 : index
      %c0_25 = arith.constant 0 : index
      %31 = vector.load %arg10[%c0_24, %c0_25] : memref<1x128xf32, #tpu.memory_space<vmem>>, vector<1x128xf32>
      %32 = vector.broadcast %31 : vector<1x128xf32> to vector<256x128xf32>
      %33 = arith.addf %30, %32 : vector<256x128xf32>
      %cst_26 = arith.constant 0.000000e+00 : f32
      %34 = vector.broadcast %cst_26 : f32 to vector<256x128xf32>
      %35 = arith.maximumf %33, %34 : vector<256x128xf32>
      %c0_27 = arith.constant 0 : index
      %c0_28 = arith.constant 0 : index
      %36 = vector.load %arg12[%c0_27, %c0_28] : memref<256x128xf32, #tpu.memory_space<vmem>>, vector<256x128xf32>
      tpu.vector_store %arg12[%c0_27, %c0_28], %35 {strides = array<i32>} : memref<256x128xf32, #tpu.memory_space<vmem>>, vector<256x128xf32>,
    } else {
    }
    return
  }
  func.func @transform_0(%arg0: i32, %arg1: i32, %arg2: memref<1xf32, #tpu.memory_space<smem>>) -> (i32, i32) {
    %c0_i32 = arith.constant 0 : i32
    return %arg0, %arg1 : i32, i32
  }
  func.func @transform_1(%arg0: i32, %arg1: i32, %arg2: memref<1xf32, #tpu.memory_space<smem>>) -> (i32, i32) {
    %c0_i32 = arith.constant 0 : i32
    %c0_i32_0 = arith.constant 0 : i32
    return %arg0, %c0_i32 : i32, i32
  }
  func.func @transform_2(%arg0: i32, %arg1: i32, %arg2: memref<1xf32, #tpu.memory_space<smem>>) -> (i32, i32) {
    %c0_i32 = arith.constant 0 : i32
    %c0_i32_0 = arith.constant 0 : i32
    %c0_i32_1 = arith.constant 0 : i32
    return %c0_i32, %c0_i32_0 : i32, i32
  }
  func.func @transform_3(%arg0: i32, %arg1: i32, %arg2: memref<1xf32, #tpu.memory_space<smem>>) -> (i32, i32) {
    %c0_i32 = arith.constant 0 : i32
    %c0_i32_0 = arith.constant 0 : i32
    %c0_i32_1 = arith.constant 0 : i32
    return %c0_i32, %c0_i32_0 : i32, i32
  }
  func.func @transform_4(%arg0: i32, %arg1: i32, %arg2: memref<1xf32, #tpu.memory_space<smem>>) -> (i32, i32) {
    %c0_i32 = arith.constant 0 : i32
    %c0_i32_0 = arith.constant 0 : i32
    %c0_i32_1 = arith.constant 0 : i32
    return %c0_i32, %c0_i32_0 : i32, i32
  }
  func.func @transform_5(%arg0: i32, %arg1: i32, %arg2: memref<1xf32, #tpu.memory_space<smem>>) -> (i32, i32) {
    %c0_i32 = arith.constant 0 : i32
    %c0_i32_0 = arith.constant 0 : i32
    %c0_i32_1 = arith.constant 0 : i32
    return %c0_i32, %c0_i32_0 : i32, i32
  }
  func.func @transform_6(%arg0: i32, %arg1: i32, %arg2: memref<1xf32, #tpu.memory_space<smem>>) -> (i32, i32) {
    %c0_i32 = arith.constant 0 : i32
    %c0_i32_0 = arith.constant 0 : i32
    %c0_i32_1 = arith.constant 0 : i32
    return %c0_i32, %c0_i32_0 : i32, i32
  }
  func.func @transform_7(%arg0: i32, %arg1: i32, %arg2: memref<1xf32, #tpu.memory_space<smem>>) -> (i32, i32) {
    %c0_i32 = arith.constant 0 : i32
    %c0_i32_0 = arith.constant 0 : i32
    %c0_i32_1 = arith.constant 0 : i32
    return %c0_i32, %c0_i32_0 : i32, i32
  }
  func.func @transform_8(%arg0: i32, %arg1: i32, %arg2: memref<1xf32, #tpu.memory_space<smem>>) -> (i32, i32) {
    %c0_i32 = arith.constant 0 : i32
    %c0_i32_0 = arith.constant 0 : i32
    return %arg0, %c0_i32 : i32, i32
  }
  func.func @transform_9(%arg0: i32, %arg1: i32, %arg2: memref<1xf32, #tpu.memory_space<smem>>) -> (i32, i32) {
    %c0_i32 = arith.constant 0 : i32
    %c0_i32_0 = arith.constant 0 : i32
    return %arg0, %c0_i32 : i32, i32
  }
}

</mosaic_0001>

<bundles_post_ra>
// kernel: gin_layer.1
= control target key start
LH: loop header
LB: loop body
LE: loop exit
PB: predicated region body
PF: predicated region fallthrough
CT: control target
= control target key end

     0   :  { %s4148_s0 = inlined_call_operand.<no memory space> [shape: f32[1], index: 0, kind: input, shape index: {}]   ;;  %s4149_s1 = inlined_call_operand.vmem [shape: bf16[512,512], index: 1, kind: input, shape index: {}]   ;;  %s4150_s2 = inlined_call_operand.vmem [shape: f32[512,128], index: 2, kind: input, shape index: {}]   ;;  %s4151_s3 = inlined_call_operand.vmem [shape: bf16[512,128], index: 3, kind: input, shape index: {}]   ;;  %s4152_s4 = inlined_call_operand.vmem [shape: f32[128,128], index: 4, kind: input, shape index: {}]   ;;  %s4153_s5 = inlined_call_operand.vmem [shape: f32[1,128], index: 5, kind: input, shape index: {}]   ;;  %s4154_s6 = inlined_call_operand.vmem [shape: f32[128,128], index: 6, kind: input, shape index: {}]   ;;  %s4155_s7 = inlined_call_operand.vmem [shape: f32[1,128], index: 7, kind: input, shape index: {}]   ;;  %s4156_s8 = inlined_call_operand.vmem [shape: f32[1,128], index: 8, kind: input, shape index: {}]   ;;  %s4157_s9 = inlined_call_operand.vmem [shape: f32[512,1], index: 9, kind: input, shape index: {}]   ;;  %s4158_s10 = inlined_call_operand.hbm [shape: f32[512,128], index: 10, kind: output, shape index: {}]  }
   0x1   :  { %15 = sst [smem:[#allocation4]] %s4148_s0 }
   0x2   :  { %16 = vsyncpa [#allocation6], 0 }
   0x3   :  { %18 = vsyncpa [#allocation6 + $0x1], 0  ;;  %s3511_s15 = smov 0   ;;  %s3513_s16 = smov 0  }
   0x4   :  { %s3515_s17 = smov 0   ;;  %s3517_s18 = smov 0  }
   0x5   :  { %s3519_s19 = smov 0   ;;  %s3521_s20 = smov 0  }
   0x6 LB: > { %s2584_s0 = sadd.s32 4294967295, %s3447_s20   ;;  %s2585_s21 = sadd.s32 4294967294, %s3447_s20   ;;  %s3447_s20 = sphi %s3521_s20, %s24_s20   ;;  %s3443_s19 = sphi %s3519_s19, %s4168_s19   ;;  %s3439_s18 = sphi %s3517_s18, %s4167_s18   ;;  %s3435_s17 = sphi %s3515_s17, %s4166_s17   ;;  %s3431_s16 = sphi %s3513_s16, %s4165_s16   ;;  %s3427_s15 = sphi %s3511_s15, %s4164_s15  }
   0x7   : > { %s36_s22 = sadd.s32 1, %s3443_s19  ;;  %s249_s23 = sadd.s32 1, %s3435_s17 }
   0x8   : > { %p38_p0 = scmp.ge.s32.totalorder %s36_s22, 2  ;;  %p259_p1 = scmp.ne.s32.totalorder %s3435_s17, %s3431_s16 }
   0x9   : > { %p260_p2 = scmp.eq.s32.totalorder %s2584_s0, 1  ;;  %p265_p3 = scmp.ne.s32.totalorder %s3431_s16, %s3427_s15 }
   0xa   : > { %s4170_s22 = smov (%p38_p0, %s36_s22), 0  ;;  %p266_p5 = scmp.eq.s32.totalorder %s2585_s21, 1 }
   0xb   : > { %4160 = sst [smem:[#allocation8_spill]] %s4170_s22  ;;  %p3551_p4 = por %p260_p2, %p259_p1 }
   0xc   : > { %s246_s25 = ssub.s32 %s3443_s19, %s4170_s22  ;;  %p2588_p6 = scmp.ge.s32.totalorder %s3447_s20, 1 }
   0xd   : > { %p247_p7 = scmp.eq.s32.totalorder %s246_s25, 0  ;;  %p3558_p8 = por %p266_p5, %p265_p3 }
   0xe   : > { %p335_p9 = scmp.lt.s32.totalorder %s3447_s20, 3 }
   0xf   : > { %s3564_s27 = scalar_select %p247_p7, %s3435_s17, %s249_s23  }
  0x10   : > { %p336_p10 = pnand %p2588_p6, %p335_p9 }
  0x11   : > { %s2590_s25 = sshll.u32 (!%p336_p10), %s3439_s18, 5  ;;  %s416_s14 = sld [smem:[#allocation4]] (!%p336_p10) }
  0x12   : > { %339 = sbr.rel (%p336_p10) target bundleno = 800 (0x320), region = 56  ;;  %p388_p11 = scmp.lt.s32.totalorder (!%p336_p10), %s2590_s25, 63 }
  0x13   : > { %s3450_s29 = smov (!%p336_p10), [#allocation5]  }
  0x14   : > { %s3375_s12 = sshll.u32 (!%p336_p10), %s3450_s29, 4  ;;  %s3376_s12 = int_to_ptr.vmem [resolvable:$false] %s3375_s12 }
  0x15   : > { %s3377_s13 = scalar_lea.vmem (!%p336_p10), %s3376_s12, 8192 }
  0x17   : > { %v3243_v0 = vld [vmem:[%s4151_s3 + $0x78] sm:$0xff]   ;;  %v3247_v4 = vld [vmem:[%s4151_s3 + $0x70] sm:$0xff]   ;;  %v3251_v8 = vld [vmem:[%s4151_s3 + $0x68] sm:$0xff]   ;;  %s4172_s25 = smov (!%p388_p11, %s2590_s25), 63  ;;  %s417_s21 = sadd.f32 1.0, %s416_s14 }
  0x18   : > { %v3244_v1 = vld [vmem:[%s4151_s3 + $0xf8] sm:$0xff]   ;;  %2703 = vmatprep.subr.bf16.mxu0 %v3243_v0  ;;  %v3248_v5 = vld [vmem:[%s4151_s3 + $0xf0] sm:$0xff]   ;;  %v3252_v9 = vld [vmem:[%s4151_s3 + $0xe8] sm:$0xff]   ;;  %s2701_s30 = sshll.u32 %s4172_s25, 4  ;;  %s2594_s0 = sshll.u32 %s4172_s25, 3 }
  0x19   : > { %v3245_v2 = vld [vmem:[%s4151_s3 + $0x38] sm:$0xff]   ;;  %2815 = vmatprep.subr.bf16.mxu1 %v3244_v1  ;;  %v3249_v6 = vld [vmem:[%s4151_s3 + $0x30] sm:$0xff]   ;;  %v3253_v10 = vld [vmem:[%s4151_s3 + $0x28] sm:$0xff]   ;;  %s3663_s28 = scalar_lea.vmem %s4149_s1, %s2701_s30  ;;  %s3789_s11 = scalar_lea.vmem %s4150_s2, %s2594_s0 }
  0x1a   : > { %v3246_v3 = vld [vmem:[%s4151_s3 + $0xb8] sm:$0xff]   ;;  %2704 = vmatpush3.bf16.msra.mxu0 %v3245_v2  ;;  %v3250_v7 = vld [vmem:[%s4151_s3 + $0xb0] sm:$0xff]   ;;  %v3254_v11 = vld [vmem:[%s4151_s3 + $0xa8] sm:$0xff]   ;;  %s3910_s23 = scalar_lea.vmem %s4157_s9, %s2594_s0  ;;  %s2702_s14 = sshll.u32 %s3439_s18, 12 }
  0x1b   : > { %2816 = vmatpush3.bf16.msra.mxu1 %v3246_v3  ;;  %2705 = vmatprep.subr.bf16.mxu0 %v3247_v4  ;;  %v3255_v12 = vld [vmem:[%s4151_s3 + $0x60] sm:$0xff]   ;;  %v3259_v16 = vld [vmem:[%s4151_s3 + $0x58] sm:$0xff]   ;;  %v3263_v20 = vld [vmem:[%s4151_s3 + $0x50] sm:$0xff]   ;;  %s4095_s0 = scalar_lea.hbm %s4158_s10, %s2702_s14 }
  0x1c   : > { %2817 = vmatprep.subr.bf16.mxu1 %v3248_v5  ;;  %v3256_v13 = vld [vmem:[%s4151_s3 + $0xe0] sm:$0xff]   ;;  %v3260_v17 = vld [vmem:[%s4151_s3 + $0xd8] sm:$0xff]   ;;  %v3264_v21 = vld [vmem:[%s4151_s3 + $0xd0] sm:$0xff]  }
  0x1d   : > { %v3257_v14 = vld [vmem:[%s4151_s3 + $0x20] sm:$0xff]   ;;  %v3261_v18 = vld [vmem:[%s4151_s3 + $0x18] sm:$0xff]   ;;  %v3265_v22 = vld [vmem:[%s4151_s3 + $0x10] sm:$0xff]  }
  0x1e   : > { %2706 = vmatpush3.bf16.msra.mxu0 %v3249_v6  ;;  %v3258_v15 = vld [vmem:[%s4151_s3 + $0xa0] sm:$0xff]   ;;  %v3262_v19 = vld [vmem:[%s4151_s3 + $0x98] sm:$0xff]   ;;  %v3266_v23 = vld [vmem:[%s4151_s3 + $0x90] sm:$0xff]  }
  0x1f   : > { %2818 = vmatpush3.bf16.msra.mxu1 %v3250_v7  ;;  %2707 = vmatprep.subr.bf16.mxu0 %v3251_v8  ;;  %v3267_v24 = vld [vmem:[%s4151_s3 + $0x48] sm:$0xff]   ;;  %v3271_v28 = vld [vmem:[%s4151_s3 + $0x40] sm:$0xff]   ;;  %v1628_v58 = vld [vmem:[%s4152_s4 + $0x78] sm:$0xff] }
  0x20   : > { %2819 = vmatprep.subr.bf16.mxu1 %v3252_v9  ;;  %v3268_v25 = vld [vmem:[%s4151_s3 + $0xc8] sm:$0xff]   ;;  %v3272_v29 = vld [vmem:[%s4151_s3 + $0xc0] sm:$0xff]   ;;  %v1627_v59 = vld [vmem:[%s4152_s4 + $0x70] sm:$0xff] }
  0x21   : > { %v3269_v26 = vld [vmem:[%s4151_s3 + $0x8] sm:$0xff]   ;;  %v3273_v30 = vld [vmem:[%s4151_s3] sm:$0xff]   ;;  %v1624_v2 = vld [vmem:[%s4152_s4 + $0x58] sm:$0xff] }
  0x22   : > { %2708 = vmatpush3.bf16.msra.mxu0 %v3253_v10  ;;  %v3270_v27 = vld [vmem:[%s4151_s3 + $0x88] sm:$0xff]   ;;  %v3274_v31 = vld [vmem:[%s4151_s3 + $0x80] sm:$0xff]   ;;  %v1623_v3 = vld [vmem:[%s4152_s4 + $0x50] sm:$0xff] }
  0x23   : > { %2820 = vmatpush3.bf16.msra.mxu1 %v3254_v11  ;;  %2709 = vmatprep.subr.bf16.mxu0 %v3255_v12  ;;  %v3275_v32 = vld [vmem:[%s3663_s28] ss:$16 sps:$4 sm:$0xff]   ;;  %v3277_v33 = vld [vmem:[%s3663_s28 + $0x4] ss:$16 sps:$4 sm:$0xff]   ;;  %v3278_v34 = vld [vmem:[%s3663_s28 + $0x8] ss:$16 sps:$4 sm:$0xff]  }
  0x24   : > { %2821 = vmatprep.subr.bf16.mxu1 %v3256_v13  ;;  %v3280_v35 = vld [vmem:[%s3663_s28 + $0xc] ss:$16 sps:$4 sm:$0xff]   ;;  %1224 = vmatprep.mubr.bf16.mxu0 %v3277_v33  ;;  %v3281_v36 = vld [vmem:[%s3663_s28 + $0x24] ss:$16 sps:$4 sm:$0xff]   ;;  %v3285_v38 = vld [vmem:[%s3663_s28 + $0x20] ss:$16 sps:$4 sm:$0xff]  }
  0x25   : > { %1385 = vmatprep.mubr.bf16.mxu1 %v3280_v35  ;;  %v3283_v37 = vld [vmem:[%s3663_s28 + $0x2c] ss:$16 sps:$4 sm:$0xff]   ;;  %v3286_v39 = vld [vmem:[%s3663_s28 + $0x28] ss:$16 sps:$4 sm:$0xff]   ;;  %v3287_v40 = vld [vmem:[%s3663_s28 + $0x44] ss:$16 sps:$4 sm:$0xff]  }
  0x26   : > { %2710 = vmatpush3.bf16.msra.mxu0 %v3257_v14  ;;  %v3289_v41 = vld [vmem:[%s3663_s28 + $0x4c] ss:$16 sps:$4 sm:$0xff]   ;;  %v3291_v42 = vld [vmem:[%s3663_s28 + $0x40] ss:$16 sps:$4 sm:$0xff]   ;;  %v3292_v43 = vld [vmem:[%s3663_s28 + $0x48] ss:$16 sps:$4 sm:$0xff]  }
  0x27   : > { %2822 = vmatpush3.bf16.msra.mxu1 %v3258_v15  ;;  %2711 = vmatprep.subr.bf16.mxu0 %v3259_v16  ;;  %v3293_v44 = vld [vmem:[%s3663_s28 + $0x64] ss:$16 sps:$4 sm:$0xff]   ;;  %v3295_v45 = vld [vmem:[%s3663_s28 + $0x6c] ss:$16 sps:$4 sm:$0xff]   ;;  %v3297_v46 = vld [vmem:[%s3663_s28 + $0x60] ss:$16 sps:$4 sm:$0xff]  }
  0x28   : > { %2823 = vmatprep.subr.bf16.mxu1 %v3260_v17  ;;  %v3298_v47 = vld [vmem:[%s3663_s28 + $0x68] ss:$16 sps:$4 sm:$0xff]   ;;  %v3299_v48 = vld [vmem:[%s3663_s28 + $0x84] ss:$16 sps:$4 sm:$0xff]   ;;  %v3301_v49 = vld [vmem:[%s3663_s28 + $0x8c] ss:$16 sps:$4 sm:$0xff]  }
  0x29   : > { %v3303_v50 = vld [vmem:[%s3663_s28 + $0x80] ss:$16 sps:$4 sm:$0xff]   ;;  %v3304_v51 = vld [vmem:[%s3663_s28 + $0x88] ss:$16 sps:$4 sm:$0xff]   ;;  %v3305_v52 = vld [vmem:[%s3663_s28 + $0xa4] ss:$16 sps:$4 sm:$0xff]  }
  0x2a   : > { %2712 = vmatpush3.bf16.msra.mxu0 %v3261_v18  ;;  %v3307_v53 = vld [vmem:[%s3663_s28 + $0xac] ss:$16 sps:$4 sm:$0xff]   ;;  %v3309_v54 = vld [vmem:[%s3663_s28 + $0xa0] ss:$16 sps:$4 sm:$0xff]   ;;  %v3310_v55 = vld [vmem:[%s3663_s28 + $0xa8] ss:$16 sps:$4 sm:$0xff]  }
  0x2b   : > { %2824 = vmatpush3.bf16.msra.mxu1 %v3262_v19  ;;  %2713 = vmatprep.subr.bf16.mxu0 %v3263_v20  ;;  %v3311_v56 = vld [vmem:[%s3663_s28 + $0xc4] ss:$16 sps:$4 sm:$0xff]   ;;  %v3313_v57 = vld [vmem:[%s3663_s28 + $0xcc] ss:$16 sps:$4 sm:$0xff]   ;;  %v3315_v61 = vld [vmem:[%s3663_s28 + $0xc0] ss:$16 sps:$4 sm:$0xff]  }
  0x2c   : > { %2825 = vmatprep.subr.bf16.mxu1 %v3264_v21  ;;  %v1626_v60 = vld [vmem:[%s4152_s4 + $0x68] sm:$0xff]  ;;  %v1625_v62 = vld [vmem:[%s4152_s4 + $0x60] sm:$0xff]  ;;  %v1620_v10 = vld [vmem:[%s4152_s4 + $0x38] sm:$0xff] }
  0x2d   : > { %v3316_v63 = vld [vmem:[%s3663_s28 + $0xc8] ss:$16 sps:$4 sm:$0xff]   ;;  %v3317_v0 = vld [vmem:[%s3663_s28 + $0xe4] ss:$16 sps:$4 sm:$0xff]   ;;  %v3319_v1 = vld [vmem:[%s3663_s28 + $0xec] ss:$16 sps:$4 sm:$0xff]  }
  0x2e   : > { %2714 = vmatpush3.bf16.msra.mxu0 %v3265_v22  ;;  %v3321_v4 = vld [vmem:[%s3663_s28 + $0xe0] ss:$16 sps:$4 sm:$0xff]   ;;  %v1622_v5 = vld [vmem:[%s4152_s4 + $0x48] sm:$0xff]  ;;  %v3323_v7 = vld [vmem:[%s3663_s28 + $0x104] ss:$16 sps:$4 sm:$0xff]  }
  0x2f   : > { %2826 = vmatpush3.bf16.msra.mxu1 %v3266_v23  ;;  %2715 = vmatprep.subr.bf16.mxu0 %v3267_v24  ;;  %v3322_v6 = vld [vmem:[%s3663_s28 + $0xe8] ss:$16 sps:$4 sm:$0xff]   ;;  %v3325_v8 = vld [vmem:[%s3663_s28 + $0x10c] ss:$16 sps:$4 sm:$0xff]   ;;  %v1621_v9 = vld [vmem:[%s4152_s4 + $0x40] sm:$0xff] }
  0x30   : > { %2827 = vmatprep.subr.bf16.mxu1 %v3268_v25  ;;  %v3327_v11 = vld [vmem:[%s3663_s28 + $0x100] ss:$16 sps:$4 sm:$0xff]   ;;  %v3328_v13 = vld [vmem:[%s3663_s28 + $0x108] ss:$16 sps:$4 sm:$0xff]   ;;  %v3329_v14 = vld [vmem:[%s3663_s28 + $0x124] ss:$16 sps:$4 sm:$0xff]  }
  0x31   : > { %v1619_v12 = vld [vmem:[%s4152_s4 + $0x30] sm:$0xff]  ;;  %v3331_v15 = vld [vmem:[%s3663_s28 + $0x12c] ss:$16 sps:$4 sm:$0xff]   ;;  %v1617_v17 = vld [vmem:[%s4152_s4 + $0x20] sm:$0xff] }
  0x32   : > { %2716 = vmatpush3.bf16.msra.mxu0 %v3269_v26  ;;  %v1618_v16 = vld [vmem:[%s4152_s4 + $0x28] sm:$0xff]  ;;  %v3333_v18 = vld [vmem:[%s3663_s28 + $0x120] ss:$16 sps:$4 sm:$0xff]   ;;  %v3335_v20 = vld [vmem:[%s3663_s28 + $0x144] ss:$16 sps:$4 sm:$0xff]  }
  0x33   : > { %2828 = vmatpush3.bf16.msra.mxu1 %v3270_v27  ;;  %2717 = vmatprep.subr.bf16.mxu0 %v3271_v28  ;;  %v3334_v19 = vld [vmem:[%s3663_s28 + $0x128] ss:$16 sps:$4 sm:$0xff]   ;;  %v3337_v22 = vld [vmem:[%s3663_s28 + $0x14c] ss:$16 sps:$4 sm:$0xff]   ;;  %v1615_v23 = vld [vmem:[%s4152_s4 + $0x10] sm:$0xff] }
  0x34   : > { %2829 = vmatprep.subr.bf16.mxu1 %v3272_v29  ;;  %v1616_v21 = vld [vmem:[%s4152_s4 + $0x18] sm:$0xff]  ;;  %v1614_v24 = vld [vmem:[%s4152_s4 + $0x8] sm:$0xff]  ;;  %v3339_v25 = vld [vmem:[%s3663_s28 + $0x140] ss:$16 sps:$4 sm:$0xff]  }
  0x35   : > { %v1613_v26 = vld [vmem:[%s4152_s4] sm:$0xff]  ;;  %v3340_v27 = vld [vmem:[%s3663_s28 + $0x148] ss:$16 sps:$4 sm:$0xff]   ;;  %v3343_v29 = vld [vmem:[%s3663_s28 + $0x16c] ss:$16 sps:$4 sm:$0xff]  }
  0x36   : > { %2718 = vmatpush3.bf16.msra.mxu0 %v3273_v30  ;;  %v3341_v28 = vld [vmem:[%s3663_s28 + $0x164] ss:$16 sps:$4 sm:$0xff]   ;;  %v3345_v30 = vld [vmem:[%s3663_s28 + $0x160] ss:$16 sps:$4 sm:$0xff]   ;;  %v3349_v33 = vld [vmem:[%s3663_s28 + $0x18c] ss:$16 sps:$4 sm:$0xff]  }
  0x37   : > { %2830 = vmatpush3.bf16.msra.mxu1 %v3274_v31  ;;  %3023 = vmatprep.subr.mxu0 %v1628_v58  ;;  %v3346_v31 = vld [vmem:[%s3663_s28 + $0x168] ss:$16 sps:$4 sm:$0xff]  }
  0x38   : > { %v3352_v35 = vld [vmem:[%s3663_s28 + $0x188] ss:$16 sps:$4 sm:$0xff]  }
  0x39   : > { %1225 = vmatmul.mubr.bf16.vlgmr.msra.gmra.mxu0 %v3275_v32  ;;  %v3347_v32 = vld [vmem:[%s3663_s28 + $0x184] ss:$16 sps:$4 sm:$0xff]  }
  0x3a   : > { %1386 = vmatmul.mubr.bf16.vlgmr.msra.gmra.mxu1 %v3278_v34  ;;  %1232 = vmatprep.mubr.bf16.mxu0 %v3281_v36  ;;  %v3351_v34 = vld [vmem:[%s3663_s28 + $0x180] ss:$16 sps:$4 sm:$0xff]   ;;  %v3353_v36 = vld [vmem:[%s3663_s28 + $0x1a4] ss:$16 sps:$4 sm:$0xff]  }
  0x3b   : > { %1393 = vmatprep.mubr.bf16.mxu1 %v3283_v37  ;;  %3024 = vmatpush3.msra.mxu0 %v1628_v58  ;;  %v3355_v37 = vld [vmem:[%s3663_s28 + $0x1ac] ss:$16 sps:$4 sm:$0xff]  }
  0x3c   : > { %3025 = vmatprep.subr.mxu0 %v1627_v59 }
  0x3d   : > { %3026 = vmatpush3.msra.mxu0 %v1627_v59  ;;  %v419_v59 = vld [vmem:[%s3789_s11 + $0x8] sm:$0xff] }
  0x3e   : > { %3027 = vmatprep.subr.mxu0 %v1626_v60 }
  0x3f   : > { %3028 = vmatpush3.msra.mxu0 %v1626_v60 }
  0x40   : > { %3029 = vmatprep.subr.mxu0 %v1625_v62 }
  0x41   : > { %1233 = vmatmul.mubr.bf16.gmra.mxu0 %v3285_v38  ;;  %v3357_v38 = vld [vmem:[%s3663_s28 + $0x1a0] ss:$16 sps:$4 sm:$0xff]  }
  0x42   : > { %1394 = vmatmul.mubr.bf16.gmra.mxu1 %v3286_v39  ;;  %1240 = vmatprep.mubr.bf16.mxu0 %v3287_v40  ;;  %v3358_v39 = vld [vmem:[%s3663_s28 + $0x1a8] ss:$16 sps:$4 sm:$0xff]   ;;  %v3359_v40 = vld [vmem:[%s3663_s28 + $0x1c4] ss:$16 sps:$4 sm:$0xff]  }
  0x43   : > { %1401 = vmatprep.mubr.bf16.mxu1 %v3289_v41  ;;  %3030 = vmatpush3.msra.mxu0 %v1625_v62  ;;  %v3361_v41 = vld [vmem:[%s3663_s28 + $0x1cc] ss:$16 sps:$4 sm:$0xff]  }
  0x44   : > { %3031 = vmatprep.subr.mxu0 %v1624_v2  ;;  %v1908_v62 = vld [vmem:[%s4154_s6 + $0x78] sm:$0xff] }
  0x45   : > { %3032 = vmatpush3.msra.mxu0 %v1624_v2  ;;  %3103 = vmatprep.subr.mxu1 %v1908_v62 }
  0x46   : > { %3033 = vmatprep.subr.mxu0 %v1623_v3  ;;  %3104 = vmatpush3.msra.mxu1 %v1908_v62 }
  0x47   : > { %3034 = vmatpush3.msra.mxu0 %v1623_v3 }
  0x48   : > { %3035 = vmatprep.subr.mxu0 %v1622_v5 }
  0x49   : > { %1241 = vmatmul.mubr.bf16.gmra.mxu0 %v3291_v42  ;;  %v3363_v42 = vld [vmem:[%s3663_s28 + $0x1c0] ss:$16 sps:$4 sm:$0xff]  }
  0x4a   : > { %1402 = vmatmul.mubr.bf16.gmra.mxu1 %v3292_v43  ;;  %1248 = vmatprep.mubr.bf16.mxu0 %v3293_v44  ;;  %v3364_v43 = vld [vmem:[%s3663_s28 + $0x1c8] ss:$16 sps:$4 sm:$0xff]   ;;  %v3365_v44 = vld [vmem:[%s3663_s28 + $0x1e4] ss:$16 sps:$4 sm:$0xff]  }
  0x4b   : > { %1409 = vmatprep.mubr.bf16.mxu1 %v3295_v45  ;;  %3036 = vmatpush3.msra.mxu0 %v1622_v5  ;;  %v3367_v45 = vld [vmem:[%s3663_s28 + $0x1ec] ss:$16 sps:$4 sm:$0xff]  }
  0x4c   : > { %3037 = vmatprep.subr.mxu0 %v1621_v9 }
  0x4d   : > { %3038 = vmatpush3.msra.mxu0 %v1621_v9 }
  0x4e   : > { %3039 = vmatprep.subr.mxu0 %v1620_v10 }
  0x4f   : > { %3040 = vmatpush3.msra.mxu0 %v1620_v10 }
  0x50   : > { %3041 = vmatprep.subr.mxu0 %v1619_v12 }
  0x51   : > { %1249 = vmatmul.mubr.bf16.gmra.mxu0 %v3297_v46  ;;  %v3369_v46 = vld [vmem:[%s3663_s28 + $0x1e0] ss:$16 sps:$4 sm:$0xff]  }
  0x52   : > { %1410 = vmatmul.mubr.bf16.gmra.mxu1 %v3298_v47  ;;  %1256 = vmatprep.mubr.bf16.mxu0 %v3299_v48  ;;  %v3370_v47 = vld [vmem:[%s3663_s28 + $0x1e8] ss:$16 sps:$4 sm:$0xff]   ;;  %s383_s28 = sand.u32 1, %s3431_s16  }
  0x53   : > { %1417 = vmatprep.mubr.bf16.mxu1 %v3301_v49  ;;  %3042 = vmatpush3.msra.mxu0 %v1619_v12  ;;  %s2589_s22 = sshll.u32 %s383_s28, 8 }
  0x54   : > { %3043 = vmatprep.subr.mxu0 %v1618_v16  ;;  %s3998_s30 = scalar_lea.vmem [#allocation5], %s2589_s22 }
  0x55   : > { %3044 = vmatpush3.msra.mxu0 %v1618_v16 }
  0x56   : > { %3045 = vmatprep.subr.mxu0 %v1617_v17 }
  0x57   : > { %3046 = vmatpush3.msra.mxu0 %v1617_v17 }
  0x58   : > { %3047 = vmatprep.subr.mxu0 %v1616_v21 }
  0x59   : > { %1257 = vmatmul.mubr.bf16.gmra.mxu0 %v3303_v50  ;;  %v3791_v50 = vstv %s417_s21  ;;  %s2482_s21 = sshll.u32 %s3998_s30, 4  ;;  %s4097_s21 = int_to_ptr.vmem [resolvable:$true] %s2482_s21 }
  0x5a   : > { %1418 = vmatmul.mubr.bf16.gmra.mxu1 %v3304_v51  ;;  %1264 = vmatprep.mubr.bf16.mxu0 %v3305_v52  ;;  %v418_v51 = vld [vmem:[%s3789_s11] sm:$0xff]  ;;  %v452_v2 = vmul.f32 %v3791_v50, %v419_v59  ;;  %s3371_s18 = scalar_lea.vmem %s4097_s21, 4096  ;;  %p3378_p1 = scmp.lt.s32.totalorder %s4097_s21, %s3376_s12 }
  0x5b   : > { %1425 = vmatprep.mubr.bf16.mxu1 %v3307_v53  ;;  %3048 = vmatpush3.msra.mxu0 %v1616_v21  ;;  %p3372_p12 = scmp.ne.s32.totalorder %s4097_s21, %s3371_s18  ;;  %p3379_p2 = scmp.lt.s32.totalorder %s3377_s13, %s3371_s18 }
  0x5c   : > { %3049 = vmatprep.subr.mxu0 %v1615_v23 }
  0x5d   : > { %3050 = vmatpush3.msra.mxu0 %v1615_v23  ;;  %v1903_v23 = vld [vmem:[%s4154_s6 + $0x50] sm:$0xff]  ;;  %p3373_p13 = pnand %p3372_p12, %p3551_p4  ;;  %p3380_p3 = por %p3379_p2, %p3378_p1 }
  0x5e   : > { %3051 = vmatprep.subr.mxu0 %v1614_v24 }
  0x5f   : > { %3052 = vmatpush3.msra.mxu0 %v1614_v24  ;;  %p3374_p0 = pneg %p3373_p13 }
  0x60   : > { %3053 = vmatprep.subr.mxu0 %v1613_v26 }
  0x61   : > { %1265 = vmatmul.mubr.bf16.gmra.mxu0 %v3309_v54  ;;  %p3381_p5 = pnand %p3380_p3, %p3374_p0 }
  0x62   : > { %1426 = vmatmul.mubr.bf16.gmra.mxu1 %v3310_v55  ;;  %1272 = vmatprep.mubr.bf16.mxu0 %v3311_v56 }
  0x63   : > { %1433 = vmatprep.mubr.bf16.mxu1 %v3313_v57  ;;  %3054 = vmatpush3.msra.mxu0 %v1613_v26  ;;  %v451_v57 = vmul.f32 %v3791_v50, %v418_v51 }
  0x69   : > { %1273 = vmatmul.mubr.bf16.gmra.mxu0 %v3315_v61 }
  0x6a   : > { %1434 = vmatmul.mubr.bf16.gmra.mxu1 %v3316_v63  ;;  %1280 = vmatprep.mubr.bf16.mxu0 %v3317_v0  ;;  %v1907_v63 = vld [vmem:[%s4154_s6 + $0x70] sm:$0xff] }
  0x6b   : > { %1441 = vmatprep.mubr.bf16.mxu1 %v3319_v1  ;;  %3105 = vmatprep.subr.mxu1 %v1907_v63 }
  0x6c   : > { %3106 = vmatpush3.msra.mxu1 %v1907_v63 }
  0x71   : > { %1281 = vmatmul.mubr.bf16.gmra.mxu0 %v3321_v4 }
  0x72   : > { %1442 = vmatmul.mubr.bf16.gmra.mxu1 %v3322_v6  ;;  %1288 = vmatprep.mubr.bf16.mxu0 %v3323_v7  ;;  %v1906_v6 = vld [vmem:[%s4154_s6 + $0x68] sm:$0xff] }
  0x73   : > { %1449 = vmatprep.mubr.bf16.mxu1 %v3325_v8  ;;  %v420_v8 = vld [vmem:[%s3789_s11 + $0x10] sm:$0xff]  ;;  %3107 = vmatprep.subr.mxu1 %v1906_v6 }
  0x74   : > { %v453_v17 = vmul.f32 %v3791_v50, %v420_v8  ;;  %3108 = vmatpush3.msra.mxu1 %v1906_v6 }
  0x79   : > { %1289 = vmatmul.mubr.bf16.gmra.mxu0 %v3327_v11  ;;  %v1905_v11 = vld [vmem:[%s4154_s6 + $0x60] sm:$0xff] }
  0x7a   : > { %1450 = vmatmul.mubr.bf16.gmra.mxu1 %v3328_v13  ;;  %1296 = vmatprep.mubr.bf16.mxu0 %v3329_v14 }
  0x7b   : > { %1457 = vmatprep.mubr.bf16.mxu1 %v3331_v15  ;;  %3109 = vmatprep.subr.mxu1 %v1905_v11 }
  0x7c   : > { %3110 = vmatpush3.msra.mxu1 %v1905_v11 }
  0x81   : > { %1297 = vmatmul.mubr.bf16.gmra.mxu0 %v3333_v18  ;;  %v1904_v18 = vld [vmem:[%s4154_s6 + $0x58] sm:$0xff] }
  0x82   : > { %1458 = vmatmul.mubr.bf16.gmra.mxu1 %v3334_v19  ;;  %1304 = vmatprep.mubr.bf16.mxu0 %v3335_v20  ;;  %v421_v20 = vld [vmem:[%s3789_s11 + $0x18] sm:$0xff] }
  0x83   : > { %1465 = vmatprep.mubr.bf16.mxu1 %v3337_v22  ;;  %3111 = vmatprep.subr.mxu1 %v1904_v18 }
  0x84   : > { %3112 = vmatpush3.msra.mxu1 %v1904_v18 }
  0x85   : > { %3113 = vmatprep.subr.mxu1 %v1903_v23 }
  0x86   : > { %3114 = vmatpush3.msra.mxu1 %v1903_v23 }
  0x89   : > { %1305 = vmatmul.mubr.bf16.gmra.mxu0 %v3339_v25 }
  0x8a   : > { %1466 = vmatmul.mubr.bf16.gmra.mxu1 %v3340_v27  ;;  %1312 = vmatprep.mubr.bf16.mxu0 %v3341_v28 }
  0x8b   : > { %1473 = vmatprep.mubr.bf16.mxu1 %v3343_v29  ;;  %v454_v29 = vmul.f32 %v3791_v50, %v421_v20 }
  0x91   : > { %1313 = vmatmul.mubr.bf16.gmra.mxu0 %v3345_v30  ;;  %v1902_v30 = vld [vmem:[%s4154_s6 + $0x48] sm:$0xff] }
  0x92   : > { %1474 = vmatmul.mubr.bf16.gmra.mxu1 %v3346_v31  ;;  %1320 = vmatprep.mubr.bf16.mxu0 %v3347_v32  ;;  %v422_v32 = vld [vmem:[%s3789_s11 + $0x20] sm:$0xff] }
  0x93   : > { %1481 = vmatprep.mubr.bf16.mxu1 %v3349_v33  ;;  %3115 = vmatprep.subr.mxu1 %v1902_v30 }
  0x94   : > { %3116 = vmatpush3.msra.mxu1 %v1902_v30 }
  0x99   : > { %1321 = vmatmul.mubr.bf16.gmra.mxu0 %v3351_v34 }
  0x9a   : > { %1482 = vmatmul.mubr.bf16.gmra.mxu1 %v3352_v35  ;;  %1328 = vmatprep.mubr.bf16.mxu0 %v3353_v36  ;;  %v1901_v35 = vld [vmem:[%s4154_s6 + $0x40] sm:$0xff] }
  0x9b   : > { %1489 = vmatprep.mubr.bf16.mxu1 %v3355_v37  ;;  %3117 = vmatprep.subr.mxu1 %v1901_v35 }
  0x9c   : > { %3118 = vmatpush3.msra.mxu1 %v1901_v35 }
  0xa1   : > { %1329 = vmatmul.mubr.bf16.gmra.mxu0 %v3357_v38 }
  0xa2   : > { %1490 = vmatmul.mubr.bf16.gmra.mxu1 %v3358_v39  ;;  %1336 = vmatprep.mubr.bf16.mxu0 %v3359_v40 }
  0xa3   : > { %1497 = vmatprep.mubr.bf16.mxu1 %v3361_v41  ;;  %v455_v41 = vmul.f32 %v3791_v50, %v422_v32 }
  0xa9   : > { %1337 = vmatmul.mubr.bf16.gmra.mxu0 %v3363_v42  ;;  %v1900_v42 = vld [vmem:[%s4154_s6 + $0x38] sm:$0xff] }
  0xaa   : > { %1498 = vmatmul.mubr.bf16.gmra.mxu1 %v3364_v43  ;;  %1344 = vmatprep.mubr.bf16.mxu0 %v3365_v44  ;;  %v423_v44 = vld [vmem:[%s3789_s11 + $0x28] sm:$0xff] }
  0xab   : > { %1505 = vmatprep.mubr.bf16.mxu1 %v3367_v45  ;;  %3119 = vmatprep.subr.mxu1 %v1900_v42 }
  0xac   : > { %3120 = vmatpush3.msra.mxu1 %v1900_v42 }
  0xb1   : > { %1345 = vmatmul.mubr.bf16.gmra.mxu0 %v3369_v46 }
  0xb2   : > { %1506 = vmatmul.mubr.bf16.gmra.mxu1 %v3370_v47  ;;  %v1899_v47 = vld [vmem:[%s4154_s6 + $0x30] sm:$0xff] }
  0xb3   : > { %3121 = vmatprep.subr.mxu1 %v1899_v47 }
  0xb4   : > { %3122 = vmatpush3.msra.mxu1 %v1899_v47 }
  0xf9   : > { %v2719_v48 = vpop.f32.mrf.mxu0 }
  0xfa   : > { %v2831_v49 = vpop.f32.mrf.mxu1 }
  0xfb   : > { %v2720_v52 = vpop.f32.mrf.mxu0 }
  0xfc   : > { %v2721_v53 = vadd.f32 %v2720_v52, %v2719_v48  ;;  %v2832_v54 = vpop.f32.mrf.mxu1 }
  0xfd   : > { %v2833_v55 = vadd.f32 %v2832_v54, %v2831_v49  ;;  %v2722_v56 = vpop.f32.mrf.mxu0  ;;  %v456_v54 = vmul.f32 %v3791_v50, %v423_v44  ;;  %v429_v44 = vld [vmem:[%s3789_s11 + $0x58] sm:$0xff] }
  0xfe   : > { %v2834_v58 = vpop.f32.mrf.mxu1 }
  0xff   : > { %v1388_v60 = vadd.f32 %v2833_v55, %v2721_v53  ;;  %v2723_v61 = vpop.f32.mrf.mxu0  ;;  %v1898_v55 = vld [vmem:[%s4154_s6 + $0x28] sm:$0xff] }
 0x100   : > { %v2724_v0 = vadd.f32 %v2723_v61, %v2722_v56  ;;  %v2835_v1 = vpop.f32.mrf.mxu1  ;;  %3123 = vmatprep.subr.mxu1 %v1898_v55 }
 0x101   : > { %v2836_v3 = vadd.f32 %v2835_v1, %v2834_v58  ;;  %v2725_v4 = vpop.f32.mrf.mxu0  ;;  %v1514_v5 = vadd.f32 %v1388_v60, %v451_v57  ;;  %v424_v57 = vld [vmem:[%s3789_s11 + $0x30] sm:$0xff]  ;;  %v1897_v60 = vld [vmem:[%s4154_s6 + $0x20] sm:$0xff]  ;;  %3124 = vmatpush3.msra.mxu1 %v1898_v55 }
 0x102   : > { %v2837_v7 = vpop.f32.mrf.mxu1  ;;  %3125 = vmatprep.subr.mxu1 %v1897_v60  ;;  %v430_v55 = vld [vmem:[%s3789_s11 + $0x60] sm:$0xff] }
 0x103   : > { %v1391_v9 = vadd.f32 %v2836_v3, %v2724_v0  ;;  %3055 = vmatprep.mubr.f32.mxu0 %v1514_v5  ;;  %v2726_v10 = vpop.f32.mrf.mxu0  ;;  %3126 = vmatpush3.msra.mxu1 %v1897_v60 }
 0x104   : > { %v2727_v12 = vadd.f32 %v2726_v10, %v2725_v4  ;;  %v2838_v13 = vpop.f32.mrf.mxu1  ;;  %v425_v4 = vld [vmem:[%s3789_s11 + $0x38] sm:$0xff] }
 0x105   : > { %v1515_v14 = vadd.f32 %v1391_v9, %v452_v2  ;;  %v2839_v15 = vadd.f32 %v2838_v13, %v2837_v7  ;;  %v2728_v16 = vpop.f32.mrf.mxu0  ;;  %v457_v2 = vmul.f32 %v3791_v50, %v424_v57 }
 0x106   : > { %v2840_v19 = vpop.f32.mrf.mxu1 }
 0x107   : > { %v1396_v21 = vadd.f32 %v2839_v15, %v2727_v12  ;;  %3056 = vmatmul.mubr.f32.vlgmr.msra.gmra.mxu0 %v1515_v14  ;;  %v2729_v22 = vpop.f32.mrf.mxu0  ;;  %v458_v12 = vmul.f32 %v3791_v50, %v425_v4  ;;  %v426_v14 = vld [vmem:[%s3789_s11 + $0x40] sm:$0xff] }
 0x108   : > { %v2730_v24 = vadd.f32 %v2729_v22, %v2728_v16  ;;  %v2841_v25 = vpop.f32.mrf.mxu1  ;;  %v459_v22 = vmul.f32 %v3791_v50, %v426_v14 }
 0x109   : > { %v2842_v26 = vadd.f32 %v2841_v25, %v2840_v19  ;;  %v2731_v27 = vpop.f32.mrf.mxu0  ;;  %v1516_v28 = vadd.f32 %v1396_v21, %v453_v17 }
 0x10a   : > { %v2843_v31 = vpop.f32.mrf.mxu1 }
 0x10b   : > { %v1399_v33 = vadd.f32 %v2842_v26, %v2730_v24  ;;  %3058 = vmatprep.mubr.f32.mxu0 %v1516_v28  ;;  %v2732_v34 = vpop.f32.mrf.mxu0  ;;  %v427_v24 = vld [vmem:[%s3789_s11 + $0x48] sm:$0xff] }
 0x10c   : > { %v2733_v36 = vadd.f32 %v2732_v34, %v2731_v27  ;;  %v2844_v37 = vpop.f32.mrf.mxu1  ;;  %v460_v32 = vmul.f32 %v3791_v50, %v427_v24  ;;  %v428_v34 = vld [vmem:[%s3789_s11 + $0x50] sm:$0xff] }
 0x10d   : > { %v2845_v38 = vadd.f32 %v2844_v37, %v2843_v31  ;;  %v2734_v39 = vpop.f32.mrf.mxu0  ;;  %v1517_v40 = vadd.f32 %v1399_v33, %v454_v29  ;;  %v461_v42 = vmul.f32 %v3791_v50, %v428_v34 }
 0x10e   : > { %v2846_v43 = vpop.f32.mrf.mxu1 }
 0x10f   : > { %v1404_v45 = vadd.f32 %v2845_v38, %v2733_v36  ;;  %3059 = vmatmul.mubr.f32.gmra.mxu0 %v1517_v40  ;;  %v2735_v46 = vpop.f32.mrf.mxu0 }
 0x110   : > { %v2736_v48 = vadd.f32 %v2735_v46, %v2734_v39  ;;  %v2847_v49 = vpop.f32.mrf.mxu1 }
 0x111   : > { %v2848_v51 = vadd.f32 %v2847_v49, %v2846_v43  ;;  %v2737_v52 = vpop.f32.mrf.mxu0  ;;  %v1518_v53 = vadd.f32 %v1404_v45, %v455_v41 }
 0x112   : > { %v2849_v56 = vpop.f32.mrf.mxu1 }
 0x113   : > { %v1407_v58 = vadd.f32 %v2848_v51, %v2736_v48  ;;  %3061 = vmatprep.mubr.f32.mxu0 %v1518_v53  ;;  %v2738_v59 = vpop.f32.mrf.mxu0  ;;  %v462_v53 = vmul.f32 %v3791_v50, %v429_v44 }
 0x114   : > { %v2739_v61 = vadd.f32 %v2738_v59, %v2737_v52  ;;  %v2850_v62 = vpop.f32.mrf.mxu1 }
 0x115   : > { %v2851_v63 = vadd.f32 %v2850_v62, %v2849_v56  ;;  %v2740_v0 = vpop.f32.mrf.mxu0  ;;  %v1519_v1 = vadd.f32 %v1407_v58, %v456_v54 }
 0x116   : > { %v2852_v3 = vpop.f32.mrf.mxu1 }
 0x117   : > { %v1412_v5 = vadd.f32 %v2851_v63, %v2739_v61  ;;  %3062 = vmatmul.mubr.f32.gmra.mxu0 %v1519_v1  ;;  %v2741_v6 = vpop.f32.mrf.mxu0  ;;  %v463_v63 = vmul.f32 %v3791_v50, %v430_v55  ;;  %v431_v1 = vld [vmem:[%s3789_s11 + $0x68] sm:$0xff] }
 0x118   : > { %v2742_v7 = vadd.f32 %v2741_v6, %v2740_v0  ;;  %v2853_v8 = vpop.f32.mrf.mxu1 }
 0x119   : > { %v2854_v9 = vadd.f32 %v2853_v8, %v2852_v3  ;;  %v2743_v10 = vpop.f32.mrf.mxu0  ;;  %v1520_v11 = vadd.f32 %v1412_v5, %v457_v2 }
 0x11a   : > { %v2855_v13 = vpop.f32.mrf.mxu1 }
 0x11b   : > { %v1415_v15 = vadd.f32 %v2854_v9, %v2742_v7  ;;  %3064 = vmatprep.mubr.f32.mxu0 %v1520_v11  ;;  %v2744_v16 = vpop.f32.mrf.mxu0  ;;  %v464_v9 = vmul.f32 %v3791_v50, %v431_v1  ;;  %v432_v11 = vld [vmem:[%s3789_s11 + $0x70] sm:$0xff] }
 0x11c   : > { %v2745_v17 = vadd.f32 %v2744_v16, %v2743_v10  ;;  %v2856_v18 = vpop.f32.mrf.mxu1 }
 0x11d   : > { %v2857_v19 = vadd.f32 %v2856_v18, %v2855_v13  ;;  %v2746_v20 = vpop.f32.mrf.mxu0  ;;  %v1521_v21 = vadd.f32 %v1415_v15, %v458_v12 }
 0x11e   : > { %v2858_v23 = vpop.f32.mrf.mxu1 }
 0x11f   : > { %v1420_v25 = vadd.f32 %v2857_v19, %v2745_v17  ;;  %3065 = vmatmul.mubr.f32.gmra.mxu0 %v1521_v21  ;;  %v2747_v26 = vpop.f32.mrf.mxu0  ;;  %v465_v19 = vmul.f32 %v3791_v50, %v432_v11  ;;  %v433_v21 = vld [vmem:[%s3789_s11 + $0x78] sm:$0xff]  ;;  %v1894_v11 = vld [vmem:[%s4154_s6 + $0x8] sm:$0xff] }
 0x120   : > { %v2748_v27 = vadd.f32 %v2747_v26, %v2746_v20  ;;  %v2859_v28 = vpop.f32.mrf.mxu1 }
 0x121   : > { %v2860_v29 = vadd.f32 %v2859_v28, %v2858_v23  ;;  %v2749_v30 = vpop.f32.mrf.mxu0  ;;  %v1522_v31 = vadd.f32 %v1420_v25, %v459_v22 }
 0x122   : > { %v2861_v33 = vpop.f32.mrf.mxu1 }
 0x123   : > { %v1423_v35 = vadd.f32 %v2860_v29, %v2748_v27  ;;  %3067 = vmatprep.mubr.f32.mxu0 %v1522_v31  ;;  %v2750_v36 = vpop.f32.mrf.mxu0  ;;  %v466_v29 = vmul.f32 %v3791_v50, %v433_v21  ;;  %v434_v31 = vld [vmem:[%s3789_s11 + $0x80] sm:$0xff] }
 0x124   : > { %v2751_v37 = vadd.f32 %v2750_v36, %v2749_v30  ;;  %v2862_v38 = vpop.f32.mrf.mxu1 }
 0x125   : > { %v2863_v39 = vadd.f32 %v2862_v38, %v2861_v33  ;;  %v2752_v40 = vpop.f32.mrf.mxu0  ;;  %v1523_v41 = vadd.f32 %v1423_v35, %v460_v32 }
 0x126   : > { %v2864_v43 = vpop.f32.mrf.mxu1 }
 0x127   : > { %v1428_v45 = vadd.f32 %v2863_v39, %v2751_v37  ;;  %3068 = vmatmul.mubr.f32.gmra.mxu0 %v1523_v41  ;;  %v2753_v46 = vpop.f32.mrf.mxu0  ;;  %v467_v39 = vmul.f32 %v3791_v50, %v434_v31  ;;  %v435_v41 = vld [vmem:[%s3789_s11 + $0x88] sm:$0xff] }
 0x128   : > { %v2754_v47 = vadd.f32 %v2753_v46, %v2752_v40  ;;  %v2865_v48 = vpop.f32.mrf.mxu1 }
 0x129   : > { %v2866_v49 = vadd.f32 %v2865_v48, %v2864_v43  ;;  %v2755_v51 = vpop.f32.mrf.mxu0  ;;  %v1524_v52 = vadd.f32 %v1428_v45, %v461_v42 }
 0x12a   : > { %v2867_v54 = vpop.f32.mrf.mxu1 }
 0x12b   : > { %v1431_v56 = vadd.f32 %v2866_v49, %v2754_v47  ;;  %3070 = vmatprep.mubr.f32.mxu0 %v1524_v52  ;;  %v2756_v57 = vpop.f32.mrf.mxu0  ;;  %v468_v49 = vmul.f32 %v3791_v50, %v435_v41  ;;  %v436_v52 = vld [vmem:[%s3789_s11 + $0x90] sm:$0xff] }
 0x12c   : > { %v2757_v58 = vadd.f32 %v2756_v57, %v2755_v51  ;;  %v2868_v59 = vpop.f32.mrf.mxu1 }
 0x12d   : > { %v2869_v60 = vadd.f32 %v2868_v59, %v2867_v54  ;;  %v2758_v61 = vpop.f32.mrf.mxu0  ;;  %v1525_v62 = vadd.f32 %v1431_v56, %v462_v53 }
 0x12e   : > { %v2870_v0 = vpop.f32.mrf.mxu1 }
 0x12f   : > { %v1436_v2 = vadd.f32 %v2869_v60, %v2757_v58  ;;  %3071 = vmatmul.mubr.f32.gmra.mxu0 %v1525_v62  ;;  %v2759_v3 = vpop.f32.mrf.mxu0  ;;  %v469_v60 = vmul.f32 %v3791_v50, %v436_v52  ;;  %v437_v62 = vld [vmem:[%s3789_s11 + $0x98] sm:$0xff] }
 0x130   : > { %v2760_v4 = vadd.f32 %v2759_v3, %v2758_v61  ;;  %v2871_v5 = vpop.f32.mrf.mxu1 }
 0x131   : > { %v2872_v6 = vadd.f32 %v2871_v5, %v2870_v0  ;;  %v2761_v7 = vpop.f32.mrf.mxu0  ;;  %v1526_v8 = vadd.f32 %v1436_v2, %v463_v63  ;;  %v1896_v63 = vld [vmem:[%s4154_s6 + $0x18] sm:$0xff] }
 0x132   : > { %v2873_v10 = vpop.f32.mrf.mxu1  ;;  %3127 = vmatprep.subr.mxu1 %v1896_v63 }
 0x133   : > { %v1439_v12 = vadd.f32 %v2872_v6, %v2760_v4  ;;  %3073 = vmatprep.mubr.f32.mxu0 %v1526_v8  ;;  %v2762_v13 = vpop.f32.mrf.mxu0  ;;  %3128 = vmatpush3.msra.mxu1 %v1896_v63  ;;  %v1895_v4 = vld [vmem:[%s4154_s6 + $0x10] sm:$0xff]  ;;  %v470_v8 = vmul.f32 %v3791_v50, %v437_v62  ;;  %v443_v63 = vld [vmem:[%s3789_s11 + $0xc8] sm:$0xff] }
 0x134   : > { %v2763_v14 = vadd.f32 %v2762_v13, %v2761_v7  ;;  %v2874_v15 = vpop.f32.mrf.mxu1  ;;  %3129 = vmatprep.subr.mxu1 %v1895_v4 }
 0x135   : > { %v2875_v16 = vadd.f32 %v2874_v15, %v2873_v10  ;;  %v2764_v17 = vpop.f32.mrf.mxu0  ;;  %v1527_v18 = vadd.f32 %v1439_v12, %v464_v9  ;;  %v438_v10 = vld [vmem:[%s3789_s11 + $0xa0] sm:$0xff]  ;;  %3130 = vmatpush3.msra.mxu1 %v1895_v4 }
 0x136   : > { %v2876_v20 = vpop.f32.mrf.mxu1  ;;  %3131 = vmatprep.subr.mxu1 %v1894_v11 }
 0x137   : > { %v1444_v22 = vadd.f32 %v2875_v16, %v2763_v14  ;;  %3074 = vmatmul.mubr.f32.gmra.mxu0 %v1527_v18  ;;  %v2765_v23 = vpop.f32.mrf.mxu0  ;;  %3132 = vmatpush3.msra.mxu1 %v1894_v11  ;;  %v1893_v16 = vld [vmem:[%s4154_s6] sm:$0xff] }
 0x138   : > { %v2766_v24 = vadd.f32 %v2765_v23, %v2764_v17  ;;  %v2877_v25 = vpop.f32.mrf.mxu1  ;;  %3133 = vmatprep.subr.mxu1 %v1893_v16 }
 0x139   : > { %v2878_v26 = vadd.f32 %v2877_v25, %v2876_v20  ;;  %v2767_v27 = vpop.f32.mrf.mxu0  ;;  %v1528_v28 = vadd.f32 %v1444_v22, %v465_v19  ;;  %v471_v20 = vmul.f32 %v3791_v50, %v438_v10  ;;  %v439_v22 = vld [vmem:[%s3789_s11 + $0xa8] sm:$0xff]  ;;  %3134 = vmatpush3.msra.mxu1 %v1893_v16 }
 0x13a   : > { %v2879_v30 = vpop.f32.mrf.mxu1 }
 0x13b   : > { %v1447_v32 = vadd.f32 %v2878_v26, %v2766_v24  ;;  %3076 = vmatprep.mubr.f32.mxu0 %v1528_v28  ;;  %v2768_v33 = vpop.f32.mrf.mxu0 }
 0x13c   : > { %v2769_v34 = vadd.f32 %v2768_v33, %v2767_v27  ;;  %v2880_v35 = vpop.f32.mrf.mxu1 }
 0x13d   : > { %v2881_v36 = vadd.f32 %v2880_v35, %v2879_v30  ;;  %v2770_v37 = vpop.f32.mrf.mxu0  ;;  %v1529_v38 = vadd.f32 %v1447_v32, %v466_v29  ;;  %v472_v30 = vmul.f32 %v3791_v50, %v439_v22  ;;  %v440_v32 = vld [vmem:[%s3789_s11 + $0xb0] sm:$0xff] }
 0x13e   : > { %v2882_v40 = vpop.f32.mrf.mxu1 }
 0x13f   : > { %v1452_v42 = vadd.f32 %v2881_v36, %v2769_v34  ;;  %3077 = vmatmul.mubr.f32.gmra.mxu0 %v1529_v38  ;;  %v2771_v43 = vpop.f32.mrf.mxu0 }
 0x140   : > { %v2772_v44 = vadd.f32 %v2771_v43, %v2770_v37  ;;  %v2883_v45 = vpop.f32.mrf.mxu1 }
 0x141   : > { %v2884_v46 = vadd.f32 %v2883_v45, %v2882_v40  ;;  %v2773_v47 = vpop.f32.mrf.mxu0  ;;  %v1530_v48 = vadd.f32 %v1452_v42, %v467_v39  ;;  %v473_v40 = vmul.f32 %v3791_v50, %v440_v32  ;;  %v441_v42 = vld [vmem:[%s3789_s11 + $0xb8] sm:$0xff] }
 0x142   : > { %v2885_v51 = vpop.f32.mrf.mxu1 }
 0x143   : > { %v1455_v53 = vadd.f32 %v2884_v46, %v2772_v44  ;;  %3079 = vmatprep.mubr.f32.mxu0 %v1530_v48  ;;  %v2774_v54 = vpop.f32.mrf.mxu0 }
 0x144   : > { %v2775_v55 = vadd.f32 %v2774_v54, %v2773_v47  ;;  %v2886_v56 = vpop.f32.mrf.mxu1 }
 0x145   : > { %v2887_v57 = vadd.f32 %v2886_v56, %v2885_v51  ;;  %v2776_v58 = vpop.f32.mrf.mxu0  ;;  %v1531_v59 = vadd.f32 %v1455_v53, %v468_v49  ;;  %v474_v51 = vmul.f32 %v3791_v50, %v441_v42  ;;  %v442_v53 = vld [vmem:[%s3789_s11 + $0xc0] sm:$0xff] }
 0x146   : > { %v2888_v61 = vpop.f32.mrf.mxu1 }
 0x147   : > { %v1460_v0 = vadd.f32 %v2887_v57, %v2775_v55  ;;  %3080 = vmatmul.mubr.f32.gmra.mxu0 %v1531_v59  ;;  %v2777_v1 = vpop.f32.mrf.mxu0 }
 0x148   : > { %v2778_v2 = vadd.f32 %v2777_v1, %v2776_v58  ;;  %v2889_v3 = vpop.f32.mrf.mxu1 }
 0x149   : > { %v2890_v5 = vadd.f32 %v2889_v3, %v2888_v61  ;;  %v2779_v6 = vpop.f32.mrf.mxu0  ;;  %v1532_v7 = vadd.f32 %v1460_v0, %v469_v60  ;;  %v475_v61 = vmul.f32 %v3791_v50, %v442_v53 }
 0x14a   : > { %v2891_v9 = vpop.f32.mrf.mxu1 }
 0x14b   : > { %v1463_v12 = vadd.f32 %v2890_v5, %v2778_v2  ;;  %3082 = vmatprep.mubr.f32.mxu0 %v1532_v7  ;;  %v2780_v13 = vpop.f32.mrf.mxu0  ;;  %v476_v7 = vmul.f32 %v3791_v50, %v443_v63 }
 0x14c   : > { %v2781_v14 = vadd.f32 %v2780_v13, %v2779_v6  ;;  %v2892_v15 = vpop.f32.mrf.mxu1 }
 0x14d   : > { %v2893_v17 = vadd.f32 %v2892_v15, %v2891_v9  ;;  %v2782_v18 = vpop.f32.mrf.mxu0  ;;  %v1533_v19 = vadd.f32 %v1463_v12, %v470_v8  ;;  %v444_v9 = vld [vmem:[%s3789_s11 + $0xd0] sm:$0xff] }
 0x14e   : > { %v2894_v21 = vpop.f32.mrf.mxu1 }
 0x14f   : > { %v1468_v23 = vadd.f32 %v2893_v17, %v2781_v14  ;;  %3083 = vmatmul.mubr.f32.gmra.mxu0 %v1533_v19  ;;  %v2783_v24 = vpop.f32.mrf.mxu0  ;;  %v477_v17 = vmul.f32 %v3791_v50, %v444_v9  ;;  %v445_v19 = vld [vmem:[%s3789_s11 + $0xd8] sm:$0xff] }
 0x150   : > { %v2784_v25 = vadd.f32 %v2783_v24, %v2782_v18  ;;  %v2895_v26 = vpop.f32.mrf.mxu1  ;;  %v2144_v9 = vld [vmem:[%s3910_s23 + $0x18] sm:$0xff] }
 0x151   : > { %v2896_v27 = vadd.f32 %v2895_v26, %v2894_v21  ;;  %v2785_v28 = vpop.f32.mrf.mxu0  ;;  %v1534_v29 = vadd.f32 %v1468_v23, %v471_v20 }
 0x152   : > { %v2897_v31 = vpop.f32.mrf.mxu1 }
 0x153   : > { %v1471_v33 = vadd.f32 %v2896_v27, %v2784_v25  ;;  %3085 = vmatprep.mubr.f32.mxu0 %v1534_v29  ;;  %v2786_v34 = vpop.f32.mrf.mxu0  ;;  %v478_v27 = vmul.f32 %v3791_v50, %v445_v19  ;;  %v446_v29 = vld [vmem:[%s3789_s11 + $0xe0] sm:$0xff] }
 0x154   : > { %v2787_v35 = vadd.f32 %v2786_v34, %v2785_v28  ;;  %v2898_v36 = vpop.f32.mrf.mxu1  ;;  %v2153_v19 = vld [vmem:[%s3910_s23 + $0x60] sm:$0xff] }
 0x155   : > { %v2899_v37 = vadd.f32 %v2898_v36, %v2897_v31  ;;  %v2788_v38 = vpop.f32.mrf.mxu0  ;;  %v1535_v39 = vadd.f32 %v1471_v33, %v472_v30 }
 0x156   : > { %v2900_v41 = vpop.f32.mrf.mxu1 }
 0x157   : > { %v1476_v43 = vadd.f32 %v2899_v37, %v2787_v35  ;;  %3086 = vmatmul.mubr.f32.gmra.mxu0 %v1535_v39  ;;  %v2789_v44 = vpop.f32.mrf.mxu0  ;;  %v479_v37 = vmul.f32 %v3791_v50, %v446_v29  ;;  %v447_v39 = vld [vmem:[%s3789_s11 + $0xe8] sm:$0xff]  ;;  %v2163_v29 = vld [vmem:[%s3910_s23 + $0xb0] sm:$0xff] }
 0x158   : > { %v2790_v45 = vadd.f32 %v2789_v44, %v2788_v38  ;;  %v2901_v46 = vpop.f32.mrf.mxu1 }
 0x159   : > { %v2902_v47 = vadd.f32 %v2901_v46, %v2900_v41  ;;  %v2791_v48 = vpop.f32.mrf.mxu0  ;;  %v1536_v49 = vadd.f32 %v1476_v43, %v473_v40 }
 0x15a   : > { %v2903_v52 = vpop.f32.mrf.mxu1 }
 0x15b   : > { %v1479_v54 = vadd.f32 %v2902_v47, %v2790_v45  ;;  %3088 = vmatprep.mubr.f32.mxu0 %v1536_v49  ;;  %v2792_v55 = vpop.f32.mrf.mxu0  ;;  %v480_v47 = vmul.f32 %v3791_v50, %v447_v39  ;;  %v448_v49 = vld [vmem:[%s3789_s11 + $0xf0] sm:$0xff] }
 0x15c   : > { %v2793_v56 = vadd.f32 %v2792_v55, %v2791_v48  ;;  %v2904_v57 = vpop.f32.mrf.mxu1 }
 0x15d   : > { %v2905_v58 = vadd.f32 %v2904_v57, %v2903_v52  ;;  %v2794_v59 = vpop.f32.mrf.mxu0  ;;  %v1537_v60 = vadd.f32 %v1479_v54, %v474_v51 }
 0x15e   : > { %v2906_v62 = vpop.f32.mrf.mxu1 }
 0x15f   : > { %v1484_v0 = vadd.f32 %v2905_v58, %v2793_v56  ;;  %3089 = vmatmul.mubr.f32.gmra.mxu0 %v1537_v60  ;;  %v2795_v1 = vpop.f32.mrf.mxu0  ;;  %v481_v58 = vmul.f32 %v3791_v50, %v448_v49  ;;  %v449_v60 = vld [vmem:[%s3789_s11 + $0xf8] sm:$0xff]  ;;  %s4103_s11 = scalar_lea.sflag [#allocation6], %s383_s28 }
 0x160   : > { %v2796_v2 = vadd.f32 %v2795_v1, %v2794_v59  ;;  %v2907_v3 = vpop.f32.mrf.mxu1 }
 0x161   : > { %v2908_v4 = vadd.f32 %v2907_v3, %v2906_v62  ;;  %v2797_v5 = vpop.f32.mrf.mxu0  ;;  %v1538_v6 = vadd.f32 %v1484_v0, %v475_v61  ;;  %v482_v3 = vmul.f32 %v3791_v50, %v449_v60  ;;  %v2141_v50 = vld [vmem:[%s3910_s23] sm:$0xff] }
 0x162   : > { %v2909_v8 = vpop.f32.mrf.mxu1 }
 0x163   : > { %v1487_v10 = vadd.f32 %v2908_v4, %v2796_v2  ;;  %3091 = vmatprep.mubr.f32.mxu0 %v1538_v6  ;;  %v2798_v11 = vpop.f32.mrf.mxu0  ;;  %v3449_v6 = vmov 0  }
 0x164   : > { %v2799_v12 = vadd.f32 %v2798_v11, %v2797_v5  ;;  %v2910_v13 = vpop.f32.mrf.mxu1  ;;  %3241 = vset.pattern.permute.xlu0 %v3449_v6  ;;  %3242 = vset.pattern.permute.xlu1 %v3449_v6  ;;  %v2145_v11 = vld [vmem:[%s3910_s23 + $0x20] sm:$0xff] }
 0x165   : > { %v2911_v14 = vadd.f32 %v2910_v13, %v2909_v8  ;;  %v2800_v15 = vpop.f32.mrf.mxu0  ;;  %v1539_v16 = vadd.f32 %v1487_v10, %v476_v7  ;;  %2175 = vperm.xlu0 %3241, %v2141_v50   ;;  %v2142_v7 = vld [vmem:[%s3910_s23 + $0x8] sm:$0xff]  ;;  %v2143_v8 = vld [vmem:[%s3910_s23 + $0x10] sm:$0xff] }
 0x166   : > { %v2912_v18 = vpop.f32.mrf.mxu1  ;;  %2185 = vperm.xlu1 %3242, %v2143_v8   ;;  %v2146_v10 = vld [vmem:[%s3910_s23 + $0x28] sm:$0xff]  ;;  %v2147_v13 = vld [vmem:[%s3910_s23 + $0x30] sm:$0xff] }
 0x167   : > { %v1492_v20 = vadd.f32 %v2911_v14, %v2799_v12  ;;  %3092 = vmatmul.mubr.f32.gmra.mxu0 %v1539_v16  ;;  %v2801_v21 = vpop.f32.mrf.mxu0  ;;  %v2148_v12 = vld [vmem:[%s3910_s23 + $0x38] sm:$0xff]  ;;  %v2150_v14 = vld [vmem:[%s3910_s23 + $0x48] sm:$0xff] }
 0x168   : > { %v2802_v22 = vadd.f32 %v2801_v21, %v2800_v15  ;;  %v2913_v23 = vpop.f32.mrf.mxu1  ;;  %v2149_v15 = vld [vmem:[%s3910_s23 + $0x40] sm:$0xff]  ;;  %v2152_v16 = vld [vmem:[%s3910_s23 + $0x58] sm:$0xff]  ;;  %v2155_v21 = vld [vmem:[%s3910_s23 + $0x70] sm:$0xff] }
 0x169   : > { %v2914_v24 = vadd.f32 %v2913_v23, %v2912_v18  ;;  %v2803_v25 = vpop.f32.mrf.mxu0  ;;  %v1540_v26 = vadd.f32 %v1492_v20, %v477_v17  ;;  %2180 = vperm.xlu0 %3241, %v2142_v7   ;;  %v2151_v17 = vld [vmem:[%s3910_s23 + $0x50] sm:$0xff]  ;;  %v2154_v18 = vld [vmem:[%s3910_s23 + $0x68] sm:$0xff]  ;;  %v2156_v20 = vld [vmem:[%s3910_s23 + $0x78] sm:$0xff] }
 0x16a   : > { %v2915_v28 = vpop.f32.mrf.mxu1  ;;  %2190 = vperm.xlu1 %3242, %v2144_v9   ;;  %v2157_v23 = vld [vmem:[%s3910_s23 + $0x80] sm:$0xff] }
 0x16b   : > { %v1495_v30 = vadd.f32 %v2914_v24, %v2802_v22  ;;  %3094 = vmatprep.mubr.f32.mxu0 %v1540_v26  ;;  %v2804_v31 = vpop.f32.mrf.mxu0  ;;  %v2158_v22 = vld [vmem:[%s3910_s23 + $0x88] sm:$0xff]  ;;  %v2160_v24 = vld [vmem:[%s3910_s23 + $0x98] sm:$0xff] }
 0x16c   : > { %v2805_v32 = vadd.f32 %v2804_v31, %v2803_v25  ;;  %v2916_v33 = vpop.f32.mrf.mxu1  ;;  %v2159_v25 = vld [vmem:[%s3910_s23 + $0x90] sm:$0xff]  ;;  %v2162_v26 = vld [vmem:[%s3910_s23 + $0xa8] sm:$0xff] }
 0x16d   : > { %v2917_v34 = vadd.f32 %v2916_v33, %v2915_v28  ;;  %v2806_v35 = vpop.f32.mrf.mxu0  ;;  %v1541_v36 = vadd.f32 %v1495_v30, %v478_v27  ;;  %2195 = vperm.xlu0 %3241, %v2145_v11   ;;  %v2161_v27 = vld [vmem:[%s3910_s23 + $0xa0] sm:$0xff]  ;;  %v2164_v28 = vld [vmem:[%s3910_s23 + $0xb8] sm:$0xff] }
 0x16e   : > { %v2918_v38 = vpop.f32.mrf.mxu1  ;;  %2200 = vperm.xlu1 %3242, %v2146_v10   ;;  %v3939_v30 = vld [vmem:[%s4153_s5] ss:$0 sm:$0xff] }
 0x16f   : > { %v1500_v40 = vadd.f32 %v2917_v34, %v2805_v32  ;;  %3095 = vmatmul.mubr.f32.gmra.mxu0 %v1541_v36  ;;  %v2807_v41 = vpop.f32.mrf.mxu0  ;;  %v2166_v32 = vld [vmem:[%s3910_s23 + $0xc8] sm:$0xff]  ;;  %v2165_v33 = vld [vmem:[%s3910_s23 + $0xc0] sm:$0xff]  ;;  %v2168_v36 = vld [vmem:[%s3910_s23 + $0xd8] sm:$0xff] }
 0x170   : > { %v2808_v42 = vadd.f32 %v2807_v41, %v2806_v35  ;;  %v2919_v43 = vpop.f32.mrf.mxu1  ;;  %v2170_v41 = vld [vmem:[%s3910_s23 + $0xe8] sm:$0xff] }
 0x171   : > { %v2920_v44 = vadd.f32 %v2919_v43, %v2918_v38  ;;  %v2809_v45 = vpop.f32.mrf.mxu0  ;;  %v1542_v46 = vadd.f32 %v1500_v40, %v479_v37  ;;  %2205 = vperm.xlu0 %3241, %v2147_v13   ;;  %v2167_v37 = vld [vmem:[%s3910_s23 + $0xd0] sm:$0xff] }
 0x172   : > { %v2921_v48 = vpop.f32.mrf.mxu1  ;;  %2210 = vperm.xlu1 %3242, %v2148_v12  }
 0x173   : > { %v1503_v51 = vadd.f32 %v2920_v44, %v2808_v42  ;;  %3097 = vmatprep.mubr.f32.mxu0 %v1542_v46  ;;  %v2810_v52 = vpop.f32.mrf.mxu0  ;;  %v2169_v42 = vld [vmem:[%s3910_s23 + $0xe0] sm:$0xff]  ;;  %v2172_v46 = vld [vmem:[%s3910_s23 + $0xf8] sm:$0xff] }
 0x174   : > { %v2811_v53 = vadd.f32 %v2810_v52, %v2809_v45  ;;  %v2922_v54 = vpop.f32.mrf.mxu1 }
 0x175   : > { %v2923_v55 = vadd.f32 %v2922_v54, %v2921_v48  ;;  %v2812_v56 = vpop.f32.mrf.mxu0  ;;  %v1543_v57 = vadd.f32 %v1503_v51, %v480_v47  ;;  %2215 = vperm.xlu0 %3241, %v2149_v15   ;;  %v2171_v47 = vld [vmem:[%s3910_s23 + $0xf0] sm:$0xff] }
 0x176   : > { %v2924_v59 = vpop.f32.mrf.mxu1  ;;  %2220 = vperm.xlu1 %3242, %v2150_v14  }
 0x177   : > { %v1508_v61 = vadd.f32 %v2923_v55, %v2811_v53  ;;  %3098 = vmatmul.mubr.f32.gmra.mxu0 %v1543_v57  ;;  %v2813_v62 = vpop.f32.mrf.mxu0 }
 0x178   : > { %v2814_v63 = vadd.f32 %v2813_v62, %v2812_v56  ;;  %v2925_v0 = vpop.f32.mrf.mxu1 }
 0x179   : > { %v2926_v1 = vadd.f32 %v2925_v0, %v2924_v59  ;;  %v1544_v2 = vadd.f32 %v1508_v61, %v481_v58  ;;  %2225 = vperm.xlu0 %3241, %v2151_v17  }
 0x17a   : > { %2230 = vperm.xlu1 %3242, %v2152_v16  }
 0x17b   : > { %v1511_v4 = vadd.f32 %v2926_v1, %v2814_v63  ;;  %3100 = vmatprep.mubr.f32.mxu0 %v1544_v2 }
 0x17d   : > { %v1545_v5 = vadd.f32 %v1511_v4, %v482_v3  ;;  %2235 = vperm.xlu0 %3241, %v2153_v19  }
 0x17e   : > { %2240 = vperm.xlu1 %3242, %v2154_v18  }
 0x17f   : > { %3101 = vmatmul.mubr.f32.gmra.mxu0 %v1545_v5 }
 0x181   : > { %2245 = vperm.xlu0 %3241, %v2155_v21  }
 0x182   : > { %2250 = vperm.xlu1 %3242, %v2156_v20  }
 0x185   : > { %2255 = vperm.xlu0 %3241, %v2157_v23  }
 0x186   : > { %2260 = vperm.xlu1 %3242, %v2158_v22  }
 0x189   : > { %2265 = vperm.xlu0 %3241, %v2159_v25  }
 0x18a   : > { %2270 = vperm.xlu1 %3242, %v2160_v24  }
 0x18d   : > { %2275 = vperm.xlu0 %3241, %v2161_v27  }
 0x18e   : > { %2280 = vperm.xlu1 %3242, %v2162_v26  }
 0x191   : > { %2285 = vperm.xlu0 %3241, %v2163_v29  }
 0x192   : > { %2290 = vperm.xlu1 %3242, %v2164_v28  }
 0x195   : > { %2295 = vperm.xlu0 %3241, %v2165_v33  }
 0x196   : > { %2300 = vperm.xlu1 %3242, %v2166_v32  }
 0x199   : > { %2305 = vperm.xlu0 %3241, %v2167_v37  }
 0x19a   : > { %2310 = vperm.xlu1 %3242, %v2168_v36  }
 0x19d   : > { %2315 = vperm.xlu0 %3241, %v2169_v42  }
 0x19e   : > { %2320 = vperm.xlu1 %3242, %v2170_v41  }
 0x1a1   : > { %2325 = vperm.xlu0 %3241, %v2171_v47  }
 0x1a2   : > { %2330 = vperm.xlu1 %3242, %v2172_v46  }
 0x1c7   : > { %v3057_v31 = vpop.f32.mrf.mxu0 }
 0x1c8   : > { %v1708_v34 = vadd.f32 %v3057_v31, %v3939_v30 }
 0x1c9   : > { %v1702_v35 = vpop.f32.mrf.mxu0 }
 0x1ca   : > { %v1703_v38 = vadd.f32 %v3939_v30, %v1702_v35  ;;  %v1862_v40 = vmax.f32 %v1708_v34, 0.0 }
 0x1cc   : > { %v1861_v39 = vmax.f32 %v1703_v38, 0.0 }
 0x1ce   : > { %3135 = vmatprep.mubr.f32.mxu1 %v1861_v39 }
 0x1cf   : > { %v3060_v43 = vpop.f32.mrf.mxu0  ;;  %3136 = vmatmul.mubr.f32.vlgmr.msra.gmra.mxu1 %v1862_v40 }
 0x1d0   : > { %v1718_v44 = vadd.f32 %v3060_v43, %v3939_v30 }
 0x1d1   : > { %v1712_v45 = vpop.f32.mrf.mxu0 }
 0x1d2   : > { %v1713_v48 = vadd.f32 %v3939_v30, %v1712_v45  ;;  %v1864_v51 = vmax.f32 %v1718_v44, 0.0 }
 0x1d4   : > { %v1863_v49 = vmax.f32 %v1713_v48, 0.0 }
 0x1d6   : > { %3138 = vmatprep.mubr.f32.mxu1 %v1863_v49 }
 0x1d7   : > { %v3063_v52 = vpop.f32.mrf.mxu0  ;;  %3139 = vmatmul.mubr.f32.gmra.mxu1 %v1864_v51 }
 0x1d8   : > { %v1728_v53 = vadd.f32 %v3063_v52, %v3939_v30 }
 0x1d9   : > { %v1722_v54 = vpop.f32.mrf.mxu0 }
 0x1da   : > { %v1723_v55 = vadd.f32 %v3939_v30, %v1722_v54  ;;  %v1866_v57 = vmax.f32 %v1728_v53, 0.0 }
 0x1dc   : > { %v1865_v56 = vmax.f32 %v1723_v55, 0.0 }
 0x1de   : > { %3141 = vmatprep.mubr.f32.mxu1 %v1865_v56 }
 0x1df   : > { %v3066_v58 = vpop.f32.mrf.mxu0  ;;  %3142 = vmatmul.mubr.f32.gmra.mxu1 %v1866_v57 }
 0x1e0   : > { %v1738_v59 = vadd.f32 %v3066_v58, %v3939_v30 }
 0x1e1   : > { %v1732_v60 = vpop.f32.mrf.mxu0 }
 0x1e2   : > { %v1733_v61 = vadd.f32 %v3939_v30, %v1732_v60  ;;  %v1868_v63 = vmax.f32 %v1738_v59, 0.0 }
 0x1e4   : > { %v1867_v62 = vmax.f32 %v1733_v61, 0.0 }
 0x1e6   : > { %3144 = vmatprep.mubr.f32.mxu1 %v1867_v62 }
 0x1e7   : > { %v3069_v0 = vpop.f32.mrf.mxu0  ;;  %3145 = vmatmul.mubr.f32.gmra.mxu1 %v1868_v63 }
 0x1e8   : > { %v1748_v1 = vadd.f32 %v3069_v0, %v3939_v30 }
 0x1e9   : > { %v1742_v2 = vpop.f32.mrf.mxu0 }
 0x1ea   : > { %v1743_v3 = vadd.f32 %v3939_v30, %v1742_v2  ;;  %v1870_v5 = vmax.f32 %v1748_v1, 0.0 }
 0x1ec   : > { %v1869_v4 = vmax.f32 %v1743_v3, 0.0 }
 0x1ee   : > { %3147 = vmatprep.mubr.f32.mxu1 %v1869_v4 }
 0x1ef   : > { %v3072_v6 = vpop.f32.mrf.mxu0  ;;  %3148 = vmatmul.mubr.f32.gmra.mxu1 %v1870_v5 }
 0x1f0   : > { %v1758_v50 = vadd.f32 %v3072_v6, %v3939_v30 }
 0x1f1   : > { %v1752_v7 = vpop.f32.mrf.mxu0 }
 0x1f2   : > { %v1753_v8 = vadd.f32 %v3939_v30, %v1752_v7  ;;  %v1872_v10 = vmax.f32 %v1758_v50, 0.0 }
 0x1f4   : > { %v1871_v9 = vmax.f32 %v1753_v8, 0.0  ;;  %v2176_v8 = vpop.permute.xlu0 %2175 }
 0x1f6   : > { %3150 = vmatprep.mubr.f32.mxu1 %v1871_v9  ;;  %v3984_v9 = vld [vmem:[%s4155_s7] ss:$0 sm:$0xff] }
 0x1f7   : > { %v3075_v11 = vpop.f32.mrf.mxu0  ;;  %3151 = vmatmul.mubr.f32.gmra.mxu1 %v1872_v10 }
 0x1f8   : > { %v1768_v12 = vadd.f32 %v3075_v11, %v3939_v30  ;;  %v2181_v11 = vpop.permute.xlu0 %2180 }
 0x1f9   : > { %v1762_v13 = vpop.f32.mrf.mxu0 }
 0x1fa   : > { %v1763_v14 = vadd.f32 %v3939_v30, %v1762_v13  ;;  %v1874_v16 = vmax.f32 %v1768_v12, 0.0  ;;  %v3991_v13 = vld [vmem:[%s4156_s8] ss:$0 sm:$0xff] }
 0x1fc   : > { %v1873_v15 = vmax.f32 %v1763_v14, 0.0 }
 0x1fe   : > { %3153 = vmatprep.mubr.f32.mxu1 %v1873_v15 }
 0x1ff   : > { %v3078_v17 = vpop.f32.mrf.mxu0  ;;  %3154 = vmatmul.mubr.f32.gmra.mxu1 %v1874_v16  ;;  %v2186_v16 = vpop.permute.xlu1 %2185 }
 0x200   : > { %v1778_v18 = vadd.f32 %v3078_v17, %v3939_v30 }
 0x201   : > { %v1772_v19 = vpop.f32.mrf.mxu0 }
 0x202   : > { %v1773_v20 = vadd.f32 %v3939_v30, %v1772_v19  ;;  %v1876_v22 = vmax.f32 %v1778_v18, 0.0 }
 0x204   : > { %v1875_v21 = vmax.f32 %v1773_v20, 0.0 }
 0x206   : > { %3156 = vmatprep.mubr.f32.mxu1 %v1875_v21 }
 0x207   : > { %v3081_v23 = vpop.f32.mrf.mxu0  ;;  %3157 = vmatmul.mubr.f32.gmra.mxu1 %v1876_v22 }
 0x208   : > { %v1788_v24 = vadd.f32 %v3081_v23, %v3939_v30 }
 0x209   : > { %v1782_v25 = vpop.f32.mrf.mxu0 }
 0x20a   : > { %v1783_v26 = vadd.f32 %v3939_v30, %v1782_v25  ;;  %v1878_v28 = vmax.f32 %v1788_v24, 0.0  ;;  %v2191_v24 = vpop.permute.xlu1 %2190 }
 0x20c   : > { %v1877_v27 = vmax.f32 %v1783_v26, 0.0 }
 0x20e   : > { %3159 = vmatprep.mubr.f32.mxu1 %v1877_v27 }
 0x20f   : > { %v3084_v29 = vpop.f32.mrf.mxu0  ;;  %3160 = vmatmul.mubr.f32.gmra.mxu1 %v1878_v28 }
 0x210   : > { %v1798_v31 = vadd.f32 %v3084_v29, %v3939_v30 }
 0x211   : > { %v1792_v32 = vpop.f32.mrf.mxu0 }
 0x212   : > { %v1793_v33 = vadd.f32 %v3939_v30, %v1792_v32  ;;  %v1880_v35 = vmax.f32 %v1798_v31, 0.0 }
 0x214   : > { %v1879_v34 = vmax.f32 %v1793_v33, 0.0 }
 0x216   : > { %3162 = vmatprep.mubr.f32.mxu1 %v1879_v34 }
 0x217   : > { %v3087_v36 = vpop.f32.mrf.mxu0  ;;  %3163 = vmatmul.mubr.f32.gmra.mxu1 %v1880_v35 }
 0x218   : > { %v1808_v37 = vadd.f32 %v3087_v36, %v3939_v30  ;;  %v2201_v36 = vpop.permute.xlu1 %2200 }
 0x219   : > { %v1802_v38 = vpop.f32.mrf.mxu0 }
 0x21a   : > { %v1803_v39 = vadd.f32 %v3939_v30, %v1802_v38  ;;  %v1882_v41 = vmax.f32 %v1808_v37, 0.0 }
 0x21c   : > { %v1881_v40 = vmax.f32 %v1803_v39, 0.0 }
 0x21e   : > { %3165 = vmatprep.mubr.f32.mxu1 %v1881_v40  ;;  %v2196_v40 = vpop.permute.xlu0 %2195 }
 0x21f   : > { %v3090_v42 = vpop.f32.mrf.mxu0  ;;  %3166 = vmatmul.mubr.f32.gmra.mxu1 %v1882_v41 }
 0x220   : > { %v1818_v43 = vadd.f32 %v3090_v42, %v3939_v30 }
 0x221   : > { %v1812_v44 = vpop.f32.mrf.mxu0 }
 0x222   : > { %v1813_v45 = vadd.f32 %v3939_v30, %v1812_v44  ;;  %v1884_v47 = vmax.f32 %v1818_v43, 0.0 }
 0x224   : > { %v1883_v46 = vmax.f32 %v1813_v45, 0.0 }
 0x226   : > { %3168 = vmatprep.mubr.f32.mxu1 %v1883_v46 }
 0x227   : > { %v3093_v48 = vpop.f32.mrf.mxu0  ;;  %3169 = vmatmul.mubr.f32.gmra.mxu1 %v1884_v47 }
 0x228   : > { %v1828_v49 = vadd.f32 %v3093_v48, %v3939_v30  ;;  %v2211_v48 = vpop.permute.xlu1 %2210 }
 0x229   : > { %v1822_v51 = vpop.f32.mrf.mxu0 }
 0x22a   : > { %v1823_v52 = vadd.f32 %v3939_v30, %v1822_v51  ;;  %v1886_v54 = vmax.f32 %v1828_v49, 0.0 }
 0x22c   : > { %v1885_v53 = vmax.f32 %v1823_v52, 0.0 }
 0x22e   : > { %3171 = vmatprep.mubr.f32.mxu1 %v1885_v53  ;;  %v2206_v53 = vpop.permute.xlu0 %2205 }
 0x22f   : > { %v3096_v55 = vpop.f32.mrf.mxu0  ;;  %3172 = vmatmul.mubr.f32.gmra.mxu1 %v1886_v54 }
 0x230   : > { %v1838_v56 = vadd.f32 %v3096_v55, %v3939_v30 }
 0x231   : > { %v1832_v57 = vpop.f32.mrf.mxu0 }
 0x232   : > { %v1833_v58 = vadd.f32 %v3939_v30, %v1832_v57  ;;  %v1888_v60 = vmax.f32 %v1838_v56, 0.0 }
 0x234   : > { %v1887_v59 = vmax.f32 %v1833_v58, 0.0 }
 0x236   : > { %3174 = vmatprep.mubr.f32.mxu1 %v1887_v59 }
 0x237   : > { %v3099_v61 = vpop.f32.mrf.mxu0  ;;  %3175 = vmatmul.mubr.f32.gmra.mxu1 %v1888_v60 }
 0x238   : > { %v1848_v62 = vadd.f32 %v3099_v61, %v3939_v30  ;;  %v2221_v61 = vpop.permute.xlu1 %2220 }
 0x239   : > { %v1842_v63 = vpop.f32.mrf.mxu0 }
 0x23a   : > { %v1843_v0 = vadd.f32 %v3939_v30, %v1842_v63  ;;  %v1890_v2 = vmax.f32 %v1848_v62, 0.0 }
 0x23c   : > { %v1889_v1 = vmax.f32 %v1843_v0, 0.0 }
 0x23e   : > { %3177 = vmatprep.mubr.f32.mxu1 %v1889_v1  ;;  %v2216_v1 = vpop.permute.xlu0 %2215 }
 0x23f   : > { %v3102_v3 = vpop.f32.mrf.mxu0  ;;  %3178 = vmatmul.mubr.f32.gmra.mxu1 %v1890_v2 }
 0x240   : > { %v1858_v4 = vadd.f32 %v3102_v3, %v3939_v30 }
 0x241   : > { %v1852_v5 = vpop.f32.mrf.mxu0 }
 0x242   : > { %v1853_v6 = vadd.f32 %v3939_v30, %v1852_v5  ;;  %v1892_v7 = vmax.f32 %v1858_v4, 0.0 }
 0x244   : > { %v1891_v50 = vmax.f32 %v1853_v6, 0.0 }
 0x246   : > { %3180 = vmatprep.mubr.f32.mxu1 %v1891_v50 }
 0x247   : > { %3181 = vmatmul.mubr.f32.gmra.mxu1 %v1892_v7 }
 0x28f   : > { %v3137_v10 = vpop.f32.mrf.mxu1 }
 0x290   : > { %v1988_v12 = vadd.f32 %v3137_v10, %v3984_v9 }
 0x291   : > { %v1982_v30 = vpop.f32.mrf.mxu1 }
 0x292   : > { %v2334_v14 = vmul.f32 %v2181_v11, %v1988_v12  ;;  %v1983_v15 = vadd.f32 %v3984_v9, %v1982_v30  ;;  %v2226_v30 = vpop.permute.xlu0 %2225 }
 0x294   : > { %v2373_v17 = vadd.f32 %v3991_v13, %v2334_v14  ;;  %v2333_v18 = vmul.f32 %v2176_v8, %v1983_v15  ;;  %v2231_v8 = vpop.permute.xlu1 %2230 }
 0x296   : > { %v2405_v19 = vmax.f32 %v2373_v17, 0.0  ;;  %v2372_v20 = vadd.f32 %v3991_v13, %v2333_v18 }
 0x297   : > { %v3140_v21 = vpop.f32.mrf.mxu1 }
 0x298   : > { %2437 = vst [vmem:[%s3998_s30 + $0x8] sm:$0xff] %v2405_v19  ;;  %v2404_v22 = vmax.f32 %v2372_v20, 0.0  ;;  %v1998_v23 = vadd.f32 %v3140_v21, %v3984_v9  ;;  %v2241_v21 = vpop.permute.xlu1 %2240 }
 0x299   : > { %v1992_v25 = vpop.f32.mrf.mxu1 }
 0x29a   : > { %2436 = vst [vmem:[%s3998_s30] sm:$0xff] %v2404_v22  ;;  %v2336_v26 = vmul.f32 %v2191_v24, %v1998_v23  ;;  %v1993_v27 = vadd.f32 %v3984_v9, %v1992_v25  ;;  %v2236_v25 = vpop.permute.xlu0 %2235 }
 0x29c   : > { %v2375_v28 = vadd.f32 %v3991_v13, %v2336_v26  ;;  %v2335_v29 = vmul.f32 %v2186_v16, %v1993_v27 }
 0x29e   : > { %v2407_v31 = vmax.f32 %v2375_v28, 0.0  ;;  %v2374_v32 = vadd.f32 %v3991_v13, %v2335_v29 }
 0x29f   : > { %v3143_v33 = vpop.f32.mrf.mxu1 }
 0x2a0   : > { %2439 = vst [vmem:[%s3998_s30 + $0x18] sm:$0xff] %v2407_v31  ;;  %v2406_v34 = vmax.f32 %v2374_v32, 0.0  ;;  %v2008_v35 = vadd.f32 %v3143_v33, %v3984_v9 }
 0x2a1   : > { %v2002_v37 = vpop.f32.mrf.mxu1 }
 0x2a2   : > { %2438 = vst [vmem:[%s3998_s30 + $0x10] sm:$0xff] %v2406_v34  ;;  %v2338_v38 = vmul.f32 %v2201_v36, %v2008_v35  ;;  %v2003_v39 = vadd.f32 %v3984_v9, %v2002_v37  ;;  %v2251_v34 = vpop.permute.xlu1 %2250 }
 0x2a4   : > { %v2377_v41 = vadd.f32 %v3991_v13, %v2338_v38  ;;  %v2337_v42 = vmul.f32 %v2196_v40, %v2003_v39  ;;  %v2246_v38 = vpop.permute.xlu0 %2245 }
 0x2a6   : > { %v2409_v43 = vmax.f32 %v2377_v41, 0.0  ;;  %v2376_v44 = vadd.f32 %v3991_v13, %v2337_v42 }
 0x2a7   : > { %v3146_v45 = vpop.f32.mrf.mxu1 }
 0x2a8   : > { %2441 = vst [vmem:[%s3998_s30 + $0x28] sm:$0xff] %v2409_v43  ;;  %v2408_v46 = vmax.f32 %v2376_v44, 0.0  ;;  %v2018_v47 = vadd.f32 %v3146_v45, %v3984_v9 }
 0x2a9   : > { %v2012_v49 = vpop.f32.mrf.mxu1 }
 0x2aa   : > { %2440 = vst [vmem:[%s3998_s30 + $0x20] sm:$0xff] %v2408_v46  ;;  %v2340_v51 = vmul.f32 %v2211_v48, %v2018_v47  ;;  %v2013_v52 = vadd.f32 %v3984_v9, %v2012_v49  ;;  %v2261_v46 = vpop.permute.xlu1 %2260 }
 0x2ac   : > { %v2379_v54 = vadd.f32 %v3991_v13, %v2340_v51  ;;  %v2339_v55 = vmul.f32 %v2206_v53, %v2013_v52  ;;  %v2256_v51 = vpop.permute.xlu0 %2255 }
 0x2ae   : > { %v2411_v56 = vmax.f32 %v2379_v54, 0.0  ;;  %v2378_v57 = vadd.f32 %v3991_v13, %v2339_v55 }
 0x2af   : > { %v3149_v58 = vpop.f32.mrf.mxu1 }
 0x2b0   : > { %2443 = vst [vmem:[%s3998_s30 + $0x38] sm:$0xff] %v2411_v56  ;;  %v2410_v59 = vmax.f32 %v2378_v57, 0.0  ;;  %v2028_v60 = vadd.f32 %v3149_v58, %v3984_v9 }
 0x2b1   : > { %v2022_v62 = vpop.f32.mrf.mxu1 }
 0x2b2   : > { %2442 = vst [vmem:[%s3998_s30 + $0x30] sm:$0xff] %v2410_v59  ;;  %v2342_v63 = vmul.f32 %v2221_v61, %v2028_v60  ;;  %v2023_v0 = vadd.f32 %v3984_v9, %v2022_v62  ;;  %v2271_v59 = vpop.permute.xlu1 %2270 }
 0x2b4   : > { %v2381_v2 = vadd.f32 %v3991_v13, %v2342_v63  ;;  %v2341_v3 = vmul.f32 %v2216_v1, %v2023_v0  ;;  %v2266_v63 = vpop.permute.xlu0 %2265 }
 0x2b6   : > { %v2413_v4 = vmax.f32 %v2381_v2, 0.0  ;;  %v2380_v5 = vadd.f32 %v3991_v13, %v2341_v3 }
 0x2b7   : > { %v3152_v6 = vpop.f32.mrf.mxu1 }
 0x2b8   : > { %2445 = vst [vmem:[%s3998_s30 + $0x48] sm:$0xff] %v2413_v4  ;;  %v2412_v50 = vmax.f32 %v2380_v5, 0.0  ;;  %v2038_v7 = vadd.f32 %v3152_v6, %v3984_v9 }
 0x2b9   : > { %v2032_v10 = vpop.f32.mrf.mxu1 }
 0x2ba   : > { %2444 = vst [vmem:[%s3998_s30 + $0x40] sm:$0xff] %v2412_v50  ;;  %v2344_v11 = vmul.f32 %v2231_v8, %v2038_v7  ;;  %v2033_v12 = vadd.f32 %v3984_v9, %v2032_v10  ;;  %v2281_v50 = vpop.permute.xlu1 %2280 }
 0x2bc   : > { %v2383_v14 = vadd.f32 %v3991_v13, %v2344_v11  ;;  %v2343_v15 = vmul.f32 %v2226_v30, %v2033_v12  ;;  %v2276_v11 = vpop.permute.xlu0 %2275 }
 0x2be   : > { %v2415_v16 = vmax.f32 %v2383_v14, 0.0  ;;  %v2382_v17 = vadd.f32 %v3991_v13, %v2343_v15 }
 0x2bf   : > { %v3155_v18 = vpop.f32.mrf.mxu1 }
 0x2c0   : > { %2447 = vst [vmem:[%s3998_s30 + $0x58] sm:$0xff] %v2415_v16  ;;  %v2414_v19 = vmax.f32 %v2382_v17, 0.0  ;;  %v2048_v20 = vadd.f32 %v3155_v18, %v3984_v9 }
 0x2c1   : > { %v2042_v22 = vpop.f32.mrf.mxu1 }
 0x2c2   : > { %2446 = vst [vmem:[%s3998_s30 + $0x50] sm:$0xff] %v2414_v19  ;;  %v2346_v23 = vmul.f32 %v2241_v21, %v2048_v20  ;;  %v2043_v24 = vadd.f32 %v3984_v9, %v2042_v22  ;;  %v2291_v19 = vpop.permute.xlu1 %2290 }
 0x2c4   : > { %v2385_v26 = vadd.f32 %v3991_v13, %v2346_v23  ;;  %v2345_v27 = vmul.f32 %v2236_v25, %v2043_v24  ;;  %v2286_v23 = vpop.permute.xlu0 %2285 }
 0x2c6   : > { %v2417_v28 = vmax.f32 %v2385_v26, 0.0  ;;  %v2384_v29 = vadd.f32 %v3991_v13, %v2345_v27 }
 0x2c7   : > { %v3158_v31 = vpop.f32.mrf.mxu1 }
 0x2c8   : > { %2449 = vst [vmem:[%s3998_s30 + $0x68] sm:$0xff] %v2417_v28  ;;  %v2416_v32 = vmax.f32 %v2384_v29, 0.0  ;;  %v2058_v33 = vadd.f32 %v3158_v31, %v3984_v9 }
 0x2c9   : > { %v2052_v35 = vpop.f32.mrf.mxu1 }
 0x2ca   : > { %2448 = vst [vmem:[%s3998_s30 + $0x60] sm:$0xff] %v2416_v32  ;;  %v2348_v36 = vmul.f32 %v2251_v34, %v2058_v33  ;;  %v2053_v37 = vadd.f32 %v3984_v9, %v2052_v35  ;;  %v2301_v32 = vpop.permute.xlu1 %2300 }
 0x2cc   : > { %v2387_v39 = vadd.f32 %v3991_v13, %v2348_v36  ;;  %v2347_v40 = vmul.f32 %v2246_v38, %v2053_v37  ;;  %v2296_v36 = vpop.permute.xlu0 %2295 }
 0x2ce   : > { %v2419_v41 = vmax.f32 %v2387_v39, 0.0  ;;  %v2386_v42 = vadd.f32 %v3991_v13, %v2347_v40 }
 0x2cf   : > { %v3161_v43 = vpop.f32.mrf.mxu1 }
 0x2d0   : > { %2451 = vst [vmem:[%s3998_s30 + $0x78] sm:$0xff] %v2419_v41  ;;  %v2418_v44 = vmax.f32 %v2386_v42, 0.0  ;;  %v2068_v45 = vadd.f32 %v3161_v43, %v3984_v9 }
 0x2d1   : > { %v2062_v47 = vpop.f32.mrf.mxu1 }
 0x2d2   : > { %2450 = vst [vmem:[%s3998_s30 + $0x70] sm:$0xff] %v2418_v44  ;;  %v2350_v48 = vmul.f32 %v2261_v46, %v2068_v45  ;;  %v2063_v49 = vadd.f32 %v3984_v9, %v2062_v47  ;;  %v2311_v44 = vpop.permute.xlu1 %2310 }
 0x2d4   : > { %v2389_v52 = vadd.f32 %v3991_v13, %v2350_v48  ;;  %v2349_v53 = vmul.f32 %v2256_v51, %v2063_v49  ;;  %v2306_v48 = vpop.permute.xlu0 %2305 }
 0x2d6   : > { %v2421_v54 = vmax.f32 %v2389_v52, 0.0  ;;  %v2388_v55 = vadd.f32 %v3991_v13, %v2349_v53 }
 0x2d7   : > { %v3164_v56 = vpop.f32.mrf.mxu1 }
 0x2d8   : > { %2453 = vst [vmem:[%s3998_s30 + $0x88] sm:$0xff] %v2421_v54  ;;  %v2420_v57 = vmax.f32 %v2388_v55, 0.0  ;;  %v2078_v58 = vadd.f32 %v3164_v56, %v3984_v9 }
 0x2d9   : > { %v2072_v60 = vpop.f32.mrf.mxu1 }
 0x2da   : > { %2452 = vst [vmem:[%s3998_s30 + $0x80] sm:$0xff] %v2420_v57  ;;  %v2352_v61 = vmul.f32 %v2271_v59, %v2078_v58  ;;  %v2073_v62 = vadd.f32 %v3984_v9, %v2072_v60  ;;  %v2321_v57 = vpop.permute.xlu1 %2320 }
 0x2dc   : > { %v2391_v0 = vadd.f32 %v3991_v13, %v2352_v61  ;;  %v2351_v1 = vmul.f32 %v2266_v63, %v2073_v62  ;;  %v2316_v61 = vpop.permute.xlu0 %2315 }
 0x2de   : > { %v2423_v2 = vmax.f32 %v2391_v0, 0.0  ;;  %v2390_v3 = vadd.f32 %v3991_v13, %v2351_v1 }
 0x2df   : > { %v3167_v4 = vpop.f32.mrf.mxu1 }
 0x2e0   : > { %2455 = vst [vmem:[%s3998_s30 + $0x98] sm:$0xff] %v2423_v2  ;;  %v2422_v5 = vmax.f32 %v2390_v3, 0.0  ;;  %v2088_v6 = vadd.f32 %v3167_v4, %v3984_v9 }
 0x2e1   : > { %v2082_v7 = vpop.f32.mrf.mxu1 }
 0x2e2   : > { %2454 = vst [vmem:[%s3998_s30 + $0x90] sm:$0xff] %v2422_v5  ;;  %v2354_v8 = vmul.f32 %v2281_v50, %v2088_v6  ;;  %v2083_v10 = vadd.f32 %v3984_v9, %v2082_v7  ;;  %v2331_v5 = vpop.permute.xlu1 %2330 }
 0x2e4   : > { %v2393_v12 = vadd.f32 %v3991_v13, %v2354_v8  ;;  %v2353_v30 = vmul.f32 %v2276_v11, %v2083_v10  ;;  %v2326_v8 = vpop.permute.xlu0 %2325 }
 0x2e6   : > { %v2425_v14 = vmax.f32 %v2393_v12, 0.0  ;;  %v2392_v15 = vadd.f32 %v3991_v13, %v2353_v30 }
 0x2e7   : > { %v3170_v16 = vpop.f32.mrf.mxu1 }
 0x2e8   : > { %2457 = vst [vmem:[%s3998_s30 + $0xa8] sm:$0xff] %v2425_v14  ;;  %v2424_v17 = vmax.f32 %v2392_v15, 0.0  ;;  %v2098_v18 = vadd.f32 %v3170_v16, %v3984_v9 }
 0x2e9   : > { %v2092_v20 = vpop.f32.mrf.mxu1 }
 0x2ea   : > { %2456 = vst [vmem:[%s3998_s30 + $0xa0] sm:$0xff] %v2424_v17  ;;  %v2356_v21 = vmul.f32 %v2291_v19, %v2098_v18  ;;  %v2093_v22 = vadd.f32 %v3984_v9, %v2092_v20 }
 0x2ec   : > { %v2395_v24 = vadd.f32 %v3991_v13, %v2356_v21  ;;  %v2355_v25 = vmul.f32 %v2286_v23, %v2093_v22 }
 0x2ee   : > { %v2427_v26 = vmax.f32 %v2395_v24, 0.0  ;;  %v2394_v27 = vadd.f32 %v3991_v13, %v2355_v25 }
 0x2ef   : > { %v3173_v28 = vpop.f32.mrf.mxu1 }
 0x2f0   : > { %2459 = vst [vmem:[%s3998_s30 + $0xb8] sm:$0xff] %v2427_v26  ;;  %v2426_v29 = vmax.f32 %v2394_v27, 0.0  ;;  %v2108_v31 = vadd.f32 %v3173_v28, %v3984_v9 }
 0x2f1   : > { %v2102_v33 = vpop.f32.mrf.mxu1 }
 0x2f2   : > { %2458 = vst [vmem:[%s3998_s30 + $0xb0] sm:$0xff] %v2426_v29  ;;  %v2358_v34 = vmul.f32 %v2301_v32, %v2108_v31  ;;  %v2103_v35 = vadd.f32 %v3984_v9, %v2102_v33 }
 0x2f4   : > { %v2397_v37 = vadd.f32 %v3991_v13, %v2358_v34  ;;  %v2357_v38 = vmul.f32 %v2296_v36, %v2103_v35 }
 0x2f6   : > { %v2429_v39 = vmax.f32 %v2397_v37, 0.0  ;;  %v2396_v40 = vadd.f32 %v3991_v13, %v2357_v38 }
 0x2f7   : > { %v3176_v41 = vpop.f32.mrf.mxu1 }
 0x2f8   : > { %2461 = vst [vmem:[%s3998_s30 + $0xc8] sm:$0xff] %v2429_v39  ;;  %v2428_v42 = vmax.f32 %v2396_v40, 0.0  ;;  %v2118_v43 = vadd.f32 %v3176_v41, %v3984_v9 }
 0x2f9   : > { %v2112_v45 = vpop.f32.mrf.mxu1 }
 0x2fa   : > { %2460 = vst [vmem:[%s3998_s30 + $0xc0] sm:$0xff] %v2428_v42  ;;  %v2360_v46 = vmul.f32 %v2311_v44, %v2118_v43  ;;  %v2113_v47 = vadd.f32 %v3984_v9, %v2112_v45 }
 0x2fc   : > { %v2399_v49 = vadd.f32 %v3991_v13, %v2360_v46  ;;  %v2359_v51 = vmul.f32 %v2306_v48, %v2113_v47 }
 0x2fe   : > { %v2431_v52 = vmax.f32 %v2399_v49, 0.0  ;;  %v2398_v53 = vadd.f32 %v3991_v13, %v2359_v51 }
 0x2ff   : > { %v3179_v54 = vpop.f32.mrf.mxu1 }
 0x300   : > { %2463 = vst [vmem:[%s3998_s30 + $0xd8] sm:$0xff] %v2431_v52  ;;  %v2430_v55 = vmax.f32 %v2398_v53, 0.0  ;;  %v2128_v56 = vadd.f32 %v3179_v54, %v3984_v9 }
 0x301   : > { %v2122_v58 = vpop.f32.mrf.mxu1 }
 0x302   : > { %2462 = vst [vmem:[%s3998_s30 + $0xd0] sm:$0xff] %v2430_v55  ;;  %v2362_v59 = vmul.f32 %v2321_v57, %v2128_v56  ;;  %v2123_v60 = vadd.f32 %v3984_v9, %v2122_v58 }
 0x304   : > { %v2401_v62 = vadd.f32 %v3991_v13, %v2362_v59  ;;  %v2361_v63 = vmul.f32 %v2316_v61, %v2123_v60 }
 0x306   : > { %v2433_v0 = vmax.f32 %v2401_v62, 0.0  ;;  %v2400_v1 = vadd.f32 %v3991_v13, %v2361_v63 }
 0x307   : > { %v3182_v2 = vpop.f32.mrf.mxu1 }
 0x308   : > { %2465 = vst [vmem:[%s3998_s30 + $0xe8] sm:$0xff] %v2433_v0  ;;  %v2432_v3 = vmax.f32 %v2400_v1, 0.0  ;;  %v2138_v4 = vadd.f32 %v3182_v2, %v3984_v9 }
 0x309   : > { %v2132_v6 = vpop.f32.mrf.mxu1 }
 0x30a   : > { %2464 = vst [vmem:[%s3998_s30 + $0xe0] sm:$0xff] %v2432_v3  ;;  %v2364_v50 = vmul.f32 %v2331_v5, %v2138_v4  ;;  %v2133_v7 = vadd.f32 %v3984_v9, %v2132_v6 }
 0x30c   : > { %v2403_v10 = vadd.f32 %v3991_v13, %v2364_v50  ;;  %v2363_v11 = vmul.f32 %v2326_v8, %v2133_v7 }
 0x30e   : > { %v2435_v12 = vmax.f32 %v2403_v10, 0.0  ;;  %v2402_v30 = vadd.f32 %v3991_v13, %v2363_v11 }
 0x310   : > { %2467 = vst [vmem:[%s3998_s30 + $0xf8] sm:$0xff] %v2435_v12  ;;  %v2434_v9 = vmax.f32 %v2402_v30, 0.0 }
 0x312   : > { %2466 = vst [vmem:[%s3998_s30 + $0xf0] sm:$0xff] %v2434_v9 }
 0x313   : > { %3384 = shalt.err (!%p3381_p5)
}
 0x314   : > { %s3385_s28 = scalar_lea.hbm %s4095_s0, 4096  ;;  %s3389_s14 = scalar_lea.hbm %s4158_s10, 8192 }
 0x315   : > { %p3386_p6 = scmp.ne.s32.totalorder %s4095_s0, %s3385_s28  ;;  %p3390_p10 = scmp.lt.s32.totalorder %s4095_s0, %s4158_s10 }
 0x316   : > { %p3391_p11 = scmp.lt.s32.totalorder %s3389_s14, %s3385_s28 }
 0x317   : > { %p3387_p7 = pnand %p3386_p6, %p3551_p4 }
 0x318   : > { %p3392_p12 = por %p3391_p11, %p3390_p10 }
 0x319   : > { %p3388_p9 = pneg %p3387_p7 }
 0x31b   : > { %p3393_p13 = pnand %p3392_p12, %p3388_p9 }
 0x31d   : > { %3396 = shalt.err (!%p3393_p13)
}
 0x31e   : > { %s3451_s18 = smov 128   ;;  %s3452_s29 = smov 8  }
 0x31f   : > { %3183 = dma.vmem_to_hbm [thread:$0]  (%p3551_p4), %s4097_s21, 4096, %s4095_s0, %s4103_s11, %s3451_s18, %s3451_s18, %s3452_s29  }
 0x320 PF: > { %p3189_p0 = scmp.ge.s32.totalorder %s3447_s20, 2  ;;  %s2497_s12 = sand.u32 1, %s3427_s15  }
 0x321   : > { %s2498_s13 = scalar_lea.sflag [#allocation6], %s2497_s12 }
 0x322   : > { %p3186_p1 = pnand %p3189_p0, %p3558_p8 }
 0x324   : > { %p3187_p2 = pneg %p3186_p1 }
 0x326   : > { %3422 = dma.done.wait (%p3187_p2), %s2498_s13, 4096  }
 0x327   : > { %3424 = vsyncadd (%p3187_p2), %s2498_s13, 4294963200  ;;  %s24_s20 = sadd.s32 1, %s3447_s20   ;;  %s4163_s24 = sld [smem:[#allocation8_spill]] }
 0x328   : > { %p21_p3 = scmp.ge.s32.totalorder %s24_s20, 4   ;;  %s4164_s15 = smov %s3431_s16 }
 0x329   : > { %s4165_s16 = smov %s3435_s17  ;;  %s4166_s17 = smov %s3564_s27 }
 0x32a   : > { %s4167_s18 = smov %s3443_s19  ;;  %23 = sbr.rel (!%p21_p3) target bundleno = 6 (0x6), region = 106 }
 0x32d   : > { %s4168_s19 = smov %s4163_s24 }
 0x32f   :  { %2503 = vsyncpa [#allocation6], 1 }
 0x330   :  { %2505 = vsyncpa [#allocation6 + $0x1], 1 }

</bundles_post_ra>
